<compile_context>
chip_gen: v7x
topology: tpu7x:2x2x1
jax: 0.10.0
libtpu: 0.0.40
codegen_flags: <defaults>
</compile_context>

<pallas_src>
import functools

import jax
import jax.numpy as jnp
from jax import lax
from jax.experimental import pallas as pl
from jax.experimental.pallas import tpu as pltpu


def _round_up(v, m):
    return (v + m - 1) // m * m


def _pick_row_tile(ho, wo, target_rows):
    """Largest divisor of ho with ho_tile * wo <= target_rows (>= 1)."""
    best = 1
    for d in range(1, ho + 1):
        if ho % d == 0 and d * wo <= target_rows:
            best = d
    return best


def _vmem_limit_bytes():
    """Generation-aware scoped-VMEM limit: ~3/4 of physical, clamped to [32,96] MiB."""
    cap = 64 * 1024 * 1024
    try:
        cap = int(getattr(pltpu.get_tpu_info(), "vmem_capacity_bytes", cap))
    except Exception:
        pass
    return max(32 * 1024 * 1024, min(96 * 1024 * 1024, (cap * 3) // 4))


# ---------------- pass 1: fused im2col + matmul (+ stats | + LeakyReLU) ----------------
def _make_conv_kernel(TH, WO, C_in, C_out, Kp, *, with_stats):
    K = 16 * C_in
    TM = TH * WO

    def kernel(p00, p01, p10, p11, w_ref, *rest):
        if with_stats:
            y_ref, st_ref, patch_ref = rest
        else:
            o_ref, patch_ref = rest
        t = pl.program_id(1)
        phases = (p00, p01, p10, p11)

        # In-kernel im2col into VMEM scratch: column (ki*4+kj)*C_in + ci holds
        # x_padded[2*ho+ki, 2*wo+kj, ci].  Zero the K..Kp padding lanes every
        # step (weight rows there are zero, but junk could be NaN).
        if Kp > K:
            patch_ref[:, K:Kp] = jnp.zeros((TM, Kp - K), jnp.bfloat16)
        for ki in range(4):
            for kj in range(4):
                ph = phases[(ki % 2) * 2 + (kj % 2)]
                tap = ph[0, pl.ds(t * TH + ki // 2, TH), pl.ds(kj // 2, WO), :]
                c0 = (ki * 4 + kj) * C_in
                patch_ref[:, c0:c0 + C_in] = tap.reshape(TM, C_in)

        acc = jnp.dot(patch_ref[...], w_ref[...],
                      preferred_element_type=jnp.float32)      # (TM, Cp) f32
        yc = acc[:, :C_out]                                     # drop padded channels

        if with_stats:
            @pl.when(t == 0)
            def _():
                st_ref[...] = jnp.zeros_like(st_ref)
            st_ref[0, 0:1, :] += jnp.sum(yc, axis=0, keepdims=True)
            st_ref[0, 1:2, :] += jnp.sum(yc * yc, axis=0, keepdims=True)
            y_ref[...] = yc.reshape(1, TH, WO, C_out).astype(y_ref.dtype)
        else:
            z = jnp.where(yc >= 0, yc, 0.2 * yc)
            o_ref[...] = z.reshape(1, TH, WO, C_out).astype(o_ref.dtype)

    return kernel


# ---------------- pass 2: per-channel scale/shift + LeakyReLU ----------------
def _bn_lrelu_kernel(y_ref, sc_ref, sh_ref, o_ref):
    sc = sc_ref[...].reshape(1, 1, 1, -1)
    sh = sh_ref[...].reshape(1, 1, 1, -1)
    z = y_ref[...].astype(jnp.float32) * sc + sh
    o_ref[...] = jnp.where(z >= 0, z, 0.2 * z)


@functools.partial(jax.jit, static_argnames=("bn",))
def down_block(x, w, gamma, beta, *, bn=True):
    """x: (N, C_in, H, W) f32; w: (C_out, C_in, 4, 4); gamma/beta: (C_out,)."""
    N, C_in, H, W = x.shape
    C_out = w.shape[0]
    if H % 2 or W % 2:
        raise ValueError("down_block expects even H, W")   # TODO(synk): odd spatial dims
    Ho, Wo = H // 2, W // 2
    K = 16 * C_in
    Kp = _round_up(K, 128)
    Cp = _round_up(C_out, 128)
    # Keep the bf16 patch scratch around <=4 MiB while targeting large tiles.
    target_rows = max(64, min(1024, (4 * 1024 * 1024) // (2 * Kp)))
    TH = _pick_row_tile(Ho, Wo, target_rows)
    T = Ho // TH
    M = N * Ho * Wo
    vmem_limit = _vmem_limit_bytes()

    # Cheap glue (~1x input copy): pad NHWC by 1 and split into 4 (row,col)
    # parity phases so every conv tap is a contiguous in-kernel slice.
    xh = jnp.pad(x.transpose(0, 2, 3, 1).astype(jnp.bfloat16),
                 ((0, 0), (1, 1), (1, 1), (0, 0)))               # (N, H+2, W+2, C_in)
    phases = [xh[:, r::2, c::2, :] for r in (0, 1) for c in (0, 1)]  # (N, Ho+1, Wo+1, C_in)

    # Weight: (C_out, C_in, 4, 4) -> rows ordered (ki, kj, ci), zero-padded so
    # the MXU contraction and output are lane-dense.
    wt = jnp.transpose(w, (2, 3, 1, 0)).reshape(K, C_out)
    wt = jnp.pad(wt, ((0, Kp - K), (0, Cp - C_out))).astype(jnp.bfloat16)

    ph_spec = pl.BlockSpec((1, Ho + 1, Wo + 1, C_in), lambda n, t: (n, 0, 0, 0))
    w_spec = pl.BlockSpec((Kp, Cp), lambda n, t: (0, 0))
    y_spec = pl.BlockSpec((1, TH, Wo, C_out), lambda n, t: (n, t, 0, 0))

    if not bn:
        out_nhwc = pl.pallas_call(
            _make_conv_kernel(TH, Wo, C_in, C_out, Kp, with_stats=False),
            out_shape=jax.ShapeDtypeStruct((N, Ho, Wo, C_out), jnp.float32),
            grid=(N, T),
            in_specs=[ph_spec] * 4 + [w_spec],
            out_specs=y_spec,
            scratch_shapes=[pltpu.VMEM((TH * Wo, Kp), jnp.bfloat16)],
            compiler_params=pltpu.CompilerParams(
                dimension_semantics=("parallel", "parallel"),
                vmem_limit_bytes=vmem_limit),
        )(*phases, wt)
    else:
        st_spec = pl.BlockSpec((1, 8, C_out), lambda n, t: (n, 0, 0))
        y, stats = pl.pallas_call(
            _make_conv_kernel(TH, Wo, C_in, C_out, Kp, with_stats=True),
            out_shape=(jax.ShapeDtypeStruct((N, Ho, Wo, C_out), jnp.bfloat16),
                       jax.ShapeDtypeStruct((N, 8, C_out), jnp.float32)),
            grid=(N, T),
            in_specs=[ph_spec] * 4 + [w_spec],
            out_specs=(y_spec, st_spec),
            scratch_shapes=[pltpu.VMEM((TH * Wo, Kp), jnp.bfloat16)],
            compiler_params=pltpu.CompilerParams(
                dimension_semantics=("parallel", "arbitrary"),
                vmem_limit_bytes=vmem_limit),
        )(*phases, wt)

        # Tiny per-channel math (f32) in the wrapper.  Stats come from the f32
        # accumulator, so the bf16 y storage does not affect them.
        s = jnp.sum(stats[:, 0, :], axis=0)
        ss = jnp.sum(stats[:, 1, :], axis=0)
        mean = s / M
        # Single-pass variance (E[y^2]-E[y]^2); clamp f32 cancellation to >= 0.
        var = jnp.maximum(ss / M - mean * mean, 0.0)
        scale = gamma.astype(jnp.float32) * lax.rsqrt(var + 1e-5)
        shift = beta.astype(jnp.float32) - mean * scale

        out_nhwc = pl.pallas_call(
            _bn_lrelu_kernel,
            out_shape=jax.ShapeDtypeStruct((N, Ho, Wo, C_out), jnp.float32),
            grid=(N, T),
            in_specs=[y_spec,
                      pl.BlockSpec((1, C_out), lambda n, t: (0, 0)),
                      pl.BlockSpec((1, C_out), lambda n, t: (0, 0))],
            out_specs=y_spec,
            compiler_params=pltpu.CompilerParams(
                dimension_semantics=("parallel", "parallel"),
                vmem_limit_bytes=vmem_limit),
        )(y, scale.reshape(1, C_out), shift.reshape(1, C_out))

    # NHWC -> NCHW for PyTorch interface parity (cheap: only C_out channels).
    return out_nhwc.transpose(0, 3, 1, 2)


def _reference(x, w, gamma, beta, *, bn=True):
    y = lax.conv_general_dilated(
        x, w, window_strides=(2, 2), padding=((1, 1), (1, 1)),
        dimension_numbers=("NCHW", "OIHW", "NCHW"))
    if bn:
        mean = jnp.mean(y, axis=(0, 2, 3), keepdims=True)
        var = jnp.mean((y - mean) ** 2, axis=(0, 2, 3), keepdims=True)
        y = (y - mean) * lax.rsqrt(var + 1e-5)
        y = y * gamma.reshape(1, -1, 1, 1) + beta.reshape(1, -1, 1, 1)
    return jnp.where(y >= 0, y, 0.2 * y)


if __name__ == "__main__":
    key = jax.random.PRNGKey(0)
    kx, kw = jax.random.split(key)

    N, C_in, H, W = 2, 4, 16, 16
    C_out = 8

    x = jax.random.normal(kx, (N, C_in, H, W), dtype=jnp.float32)
    w = 0.1 * jax.random.normal(kw, (C_out, C_in, 4, 4), dtype=jnp.float32)
    gamma = jnp.ones((C_out,), dtype=jnp.float32)   # BatchNorm2d default weight
    beta = jnp.zeros((C_out,), dtype=jnp.float32)   # BatchNorm2d default bias

    # bn=True path (conv -> batchnorm(train) -> leaky relu)
    out = jax.block_until_ready(down_block(x, w, gamma, beta, bn=True))
    ref = jax.block_until_ready(_reference(x, w, gamma, beta, bn=True))
    assert out.shape == (N, C_out, H // 2, W // 2)
    # bf16 MXU inputs + bf16 intermediate y (f32 stats) -> loose tolerance
    assert jnp.max(jnp.abs(out - ref)) < 5e-2

    # bn=False path (conv -> leaky relu)
    out2 = jax.block_until_ready(down_block(x, w, gamma, beta, bn=False))
    ref2 = jax.block_until_ready(_reference(x, w, gamma, beta, bn=False))
    assert out2.shape == (N, C_out, H // 2, W // 2)
    assert jnp.max(jnp.abs(out2 - ref2)) < 5e-2

    print("KERNEL_OK")
</pallas_src>

<mosaic_0001>
module attributes {stable_mosaic.version = 11 : i64} {
  func.func @_bn_lrelu_kernel(%arg0: i32, %arg1: i32, %arg2: memref<1x8x8x8xbf16, #tpu.memory_space<vmem>>, %arg3: memref<1x8xf32, #tpu.memory_space<vmem>>, %arg4: memref<1x8xf32, #tpu.memory_space<vmem>>, %arg5: memref<1x8x8x8xf32, #tpu.memory_space<vmem>>) attributes {dimension_semantics = [#tpu.dimension_semantics<parallel>, #tpu.dimension_semantics<parallel>], iteration_bounds = array<i64: 2, 1>, scalar_prefetch = 0 : i64, scratch_operands = 0 : i64, tpu.core_type = #tpu.core_type<tc>, window_params = [{transform_indices = @transform_0, window_bounds = array<i64: 1, 8, 8, 8>}, {pipeline_mode = #tpu.pipeline_mode<synchronous>, transform_indices = @transform_1, window_bounds = array<i64: 1, 8>}, {pipeline_mode = #tpu.pipeline_mode<synchronous>, transform_indices = @transform_2, window_bounds = array<i64: 1, 8>}, {transform_indices = @transform_3, window_bounds = array<i64: 1, 8, 8, 8>}]} {
    %c0 = arith.constant 0 : index
    %c0_0 = arith.constant 0 : index
    %0 = vector.load %arg3[%c0, %c0_0] : memref<1x8xf32, #tpu.memory_space<vmem>>, vector<1x8xf32>
    %1 = vector.shape_cast %0 : vector<1x8xf32> to vector<1x1x1x8xf32>
    %c0_1 = arith.constant 0 : index
    %c0_2 = arith.constant 0 : index
    %2 = vector.load %arg4[%c0_1, %c0_2] : memref<1x8xf32, #tpu.memory_space<vmem>>, vector<1x8xf32>
    %3 = vector.shape_cast %2 : vector<1x8xf32> to vector<1x1x1x8xf32>
    %c0_3 = arith.constant 0 : index
    %c0_4 = arith.constant 0 : index
    %c0_5 = arith.constant 0 : index
    %c0_6 = arith.constant 0 : index
    %4 = vector.load %arg2[%c0_3, %c0_4, %c0_5, %c0_6] : memref<1x8x8x8xbf16, #tpu.memory_space<vmem>>, vector<1x8x8x8xbf16>
    %5 = arith.extf %4 : vector<1x8x8x8xbf16> to vector<1x8x8x8xf32>
    %6 = vector.broadcast %1 : vector<1x1x1x8xf32> to vector<1x8x8x8xf32>
    %7 = arith.mulf %5, %6 : vector<1x8x8x8xf32>
    %8 = vector.broadcast %3 : vector<1x1x1x8xf32> to vector<1x8x8x8xf32>
    %9 = arith.addf %7, %8 : vector<1x8x8x8xf32>
    %cst = arith.constant 0.000000e+00 : f32
    %10 = vector.broadcast %cst : f32 to vector<1x8x8x8xf32>
    %11 = arith.cmpf oge, %9, %10 : vector<1x8x8x8xf32>
    %cst_7 = arith.constant 2.000000e-01 : f32
    %12 = vector.broadcast %cst_7 : f32 to vector<1x8x8x8xf32>
    %13 = arith.mulf %12, %9 : vector<1x8x8x8xf32>
    %14 = arith.select %11, %9, %13 : vector<1x8x8x8xi1>, vector<1x8x8x8xf32>
    %c0_8 = arith.constant 0 : index
    %c0_9 = arith.constant 0 : index
    %c0_10 = arith.constant 0 : index
    %c0_11 = arith.constant 0 : index
    %15 = vector.load %arg5[%c0_8, %c0_9, %c0_10, %c0_11] : memref<1x8x8x8xf32, #tpu.memory_space<vmem>>, vector<1x8x8x8xf32>
    tpu.vector_store %arg5[%c0_8, %c0_9, %c0_10, %c0_11], %14 {strides = array<i32>} : memref<1x8x8x8xf32, #tpu.memory_space<vmem>>, vector<1x8x8x8xf32>,
    return
  }
  func.func @transform_0(%arg0: i32, %arg1: i32) -> (i32, i32, i32, i32) {
    %c0_i32 = arith.constant 0 : i32
    %c0_i32_0 = arith.constant 0 : i32
    %c0_i32_1 = arith.constant 0 : i32
    return %arg0, %arg1, %c0_i32, %c0_i32_0 : i32, i32, i32, i32
  }
  func.func @transform_1(%arg0: i32, %arg1: i32) -> (i32, i32) {
    %c0_i32 = arith.constant 0 : i32
    %c0_i32_0 = arith.constant 0 : i32
    %c0_i32_1 = arith.constant 0 : i32
    return %c0_i32, %c0_i32_0 : i32, i32
  }
  func.func @transform_2(%arg0: i32, %arg1: i32) -> (i32, i32) {
    %c0_i32 = arith.constant 0 : i32
    %c0_i32_0 = arith.constant 0 : i32
    %c0_i32_1 = arith.constant 0 : i32
    return %c0_i32, %c0_i32_0 : i32, i32
  }
  func.func @transform_3(%arg0: i32, %arg1: i32) -> (i32, i32, i32, i32) {
    %c0_i32 = arith.constant 0 : i32
    %c0_i32_0 = arith.constant 0 : i32
    %c0_i32_1 = arith.constant 0 : i32
    return %arg0, %arg1, %c0_i32, %c0_i32_0 : i32, i32, i32, i32
  }
}

module attributes {stable_mosaic.version = 11 : i64} {
  func.func @kernel(%arg0: i32, %arg1: i32, %arg2: memref<1x9x9x4xbf16, #tpu.memory_space<vmem>>, %arg3: memref<1x9x9x4xbf16, #tpu.memory_space<vmem>>, %arg4: memref<1x9x9x4xbf16, #tpu.memory_space<vmem>>, %arg5: memref<1x9x9x4xbf16, #tpu.memory_space<vmem>>, %arg6: memref<128x128xbf16, #tpu.memory_space<vmem>>, %arg7: memref<1x8x8x8xbf16, #tpu.memory_space<vmem>>, %arg8: memref<1x8x8xf32, #tpu.memory_space<vmem>>, %arg9: memref<64x128xbf16, #tpu.memory_space<vmem>>) attributes {dimension_semantics = [#tpu.dimension_semantics<parallel>, #tpu.dimension_semantics<arbitrary>], iteration_bounds = array<i64: 2, 1>, scalar_prefetch = 0 : i64, scratch_operands = 1 : i64, tpu.core_type = #tpu.core_type<tc>, window_params = [{transform_indices = @transform_0, window_bounds = array<i64: 1, 9, 9, 4>}, {transform_indices = @transform_1, window_bounds = array<i64: 1, 9, 9, 4>}, {transform_indices = @transform_2, window_bounds = array<i64: 1, 9, 9, 4>}, {transform_indices = @transform_3, window_bounds = array<i64: 1, 9, 9, 4>}, {pipeline_mode = #tpu.pipeline_mode<synchronous>, transform_indices = @transform_4, window_bounds = array<i64: 128, 128>}, {transform_indices = @transform_5, window_bounds = array<i64: 1, 8, 8, 8>}, {transform_indices = @transform_6, window_bounds = array<i64: 1, 8, 8>}]} {
    %cst = arith.constant 0.000000e+00 : bf16
    %0 = vector.broadcast %cst : bf16 to vector<64x64xbf16>
    %c0 = arith.constant 0 : index
    %c64 = arith.constant 64 : index
    %1 = vector.load %arg9[%c0, %c64] : memref<64x128xbf16, #tpu.memory_space<vmem>>, vector<64x64xbf16>
    tpu.vector_store %arg9[%c0, %c64], %0 {strides = array<i32>} : memref<64x128xbf16, #tpu.memory_space<vmem>>, vector<64x64xbf16>,
    %c8_i32 = arith.constant 8 : i32
    %2 = arith.muli %arg1, %c8_i32 : i32
    %c0_i32 = arith.constant 0 : i32
    %3 = arith.addi %2, %c0_i32 : i32
    %c0_0 = arith.constant 0 : index
    %4 = arith.index_cast %3 : i32 to index
    %c0_1 = arith.constant 0 : index
    %c0_2 = arith.constant 0 : index
    %5 = vector.load %arg2[%c0_0, %4, %c0_1, %c0_2] : memref<1x9x9x4xbf16, #tpu.memory_space<vmem>>, vector<1x8x8x4xbf16>
    %6 = vector.shape_cast %5 : vector<1x8x8x4xbf16> to vector<8x8x4xbf16>
    %7 = vector.shape_cast %6 : vector<8x8x4xbf16> to vector<64x4xbf16>
    %c0_3 = arith.constant 0 : index
    %c0_4 = arith.constant 0 : index
    %8 = vector.load %arg9[%c0_3, %c0_4] : memref<64x128xbf16, #tpu.memory_space<vmem>>, vector<64x4xbf16>
    tpu.vector_store %arg9[%c0_3, %c0_4], %7 {strides = array<i32>} : memref<64x128xbf16, #tpu.memory_space<vmem>>, vector<64x4xbf16>,
    %c8_i32_5 = arith.constant 8 : i32
    %9 = arith.muli %arg1, %c8_i32_5 : i32
    %c0_i32_6 = arith.constant 0 : i32
    %10 = arith.addi %9, %c0_i32_6 : i32
    %c0_7 = arith.constant 0 : index
    %11 = arith.index_cast %10 : i32 to index
    %c0_8 = arith.constant 0 : index
    %c0_9 = arith.constant 0 : index
    %12 = vector.load %arg3[%c0_7, %11, %c0_8, %c0_9] : memref<1x9x9x4xbf16, #tpu.memory_space<vmem>>, vector<1x8x8x4xbf16>
    %13 = vector.shape_cast %12 : vector<1x8x8x4xbf16> to vector<8x8x4xbf16>
    %14 = vector.shape_cast %13 : vector<8x8x4xbf16> to vector<64x4xbf16>
    %c0_10 = arith.constant 0 : index
    %c4 = arith.constant 4 : index
    %15 = vector.load %arg9[%c0_10, %c4] : memref<64x128xbf16, #tpu.memory_space<vmem>>, vector<64x4xbf16>
    tpu.vector_store %arg9[%c0_10, %c4], %14 {strides = array<i32>} : memref<64x128xbf16, #tpu.memory_space<vmem>>, vector<64x4xbf16>,
    %c8_i32_11 = arith.constant 8 : i32
    %16 = arith.muli %arg1, %c8_i32_11 : i32
    %c0_i32_12 = arith.constant 0 : i32
    %17 = arith.addi %16, %c0_i32_12 : i32
    %c0_13 = arith.constant 0 : index
    %18 = arith.index_cast %17 : i32 to index
    %c1 = arith.constant 1 : index
    %c0_14 = arith.constant 0 : index
    %19 = vector.load %arg2[%c0_13, %18, %c1, %c0_14] : memref<1x9x9x4xbf16, #tpu.memory_space<vmem>>, vector<1x8x8x4xbf16>
    %20 = vector.shape_cast %19 : vector<1x8x8x4xbf16> to vector<8x8x4xbf16>
    %21 = vector.shape_cast %20 : vector<8x8x4xbf16> to vector<64x4xbf16>
    %c0_15 = arith.constant 0 : index
    %c8 = arith.constant 8 : index
    %22 = vector.load %arg9[%c0_15, %c8] : memref<64x128xbf16, #tpu.memory_space<vmem>>, vector<64x4xbf16>
    tpu.vector_store %arg9[%c0_15, %c8], %21 {strides = array<i32>} : memref<64x128xbf16, #tpu.memory_space<vmem>>, vector<64x4xbf16>,
    %c8_i32_16 = arith.constant 8 : i32
    %23 = arith.muli %arg1, %c8_i32_16 : i32
    %c0_i32_17 = arith.constant 0 : i32
    %24 = arith.addi %23, %c0_i32_17 : i32
    %c0_18 = arith.constant 0 : index
    %25 = arith.index_cast %24 : i32 to index
    %c1_19 = arith.constant 1 : index
    %c0_20 = arith.constant 0 : index
    %26 = vector.load %arg3[%c0_18, %25, %c1_19, %c0_20] : memref<1x9x9x4xbf16, #tpu.memory_space<vmem>>, vector<1x8x8x4xbf16>
    %27 = vector.shape_cast %26 : vector<1x8x8x4xbf16> to vector<8x8x4xbf16>
    %28 = vector.shape_cast %27 : vector<8x8x4xbf16> to vector<64x4xbf16>
    %c0_21 = arith.constant 0 : index
    %c12 = arith.constant 12 : index
    %29 = vector.load %arg9[%c0_21, %c12] : memref<64x128xbf16, #tpu.memory_space<vmem>>, vector<64x4xbf16>
    tpu.vector_store %arg9[%c0_21, %c12], %28 {strides = array<i32>} : memref<64x128xbf16, #tpu.memory_space<vmem>>, vector<64x4xbf16>,
    %c8_i32_22 = arith.constant 8 : i32
    %30 = arith.muli %arg1, %c8_i32_22 : i32
    %c0_i32_23 = arith.constant 0 : i32
    %31 = arith.addi %30, %c0_i32_23 : i32
    %c0_24 = arith.constant 0 : index
    %32 = arith.index_cast %31 : i32 to index
    %c0_25 = arith.constant 0 : index
    %c0_26 = arith.constant 0 : index
    %33 = vector.load %arg4[%c0_24, %32, %c0_25, %c0_26] : memref<1x9x9x4xbf16, #tpu.memory_space<vmem>>, vector<1x8x8x4xbf16>
    %34 = vector.shape_cast %33 : vector<1x8x8x4xbf16> to vector<8x8x4xbf16>
    %35 = vector.shape_cast %34 : vector<8x8x4xbf16> to vector<64x4xbf16>
    %c0_27 = arith.constant 0 : index
    %c16 = arith.constant 16 : index
    %36 = vector.load %arg9[%c0_27, %c16] : memref<64x128xbf16, #tpu.memory_space<vmem>>, vector<64x4xbf16>
    tpu.vector_store %arg9[%c0_27, %c16], %35 {strides = array<i32>} : memref<64x128xbf16, #tpu.memory_space<vmem>>, vector<64x4xbf16>,
    %c8_i32_28 = arith.constant 8 : i32
    %37 = arith.muli %arg1, %c8_i32_28 : i32
    %c0_i32_29 = arith.constant 0 : i32
    %38 = arith.addi %37, %c0_i32_29 : i32
    %c0_30 = arith.constant 0 : index
    %39 = arith.index_cast %38 : i32 to index
    %c0_31 = arith.constant 0 : index
    %c0_32 = arith.constant 0 : index
    %40 = vector.load %arg5[%c0_30, %39, %c0_31, %c0_32] : memref<1x9x9x4xbf16, #tpu.memory_space<vmem>>, vector<1x8x8x4xbf16>
    %41 = vector.shape_cast %40 : vector<1x8x8x4xbf16> to vector<8x8x4xbf16>
    %42 = vector.shape_cast %41 : vector<8x8x4xbf16> to vector<64x4xbf16>
    %c0_33 = arith.constant 0 : index
    %c20 = arith.constant 20 : index
    %43 = vector.load %arg9[%c0_33, %c20] : memref<64x128xbf16, #tpu.memory_space<vmem>>, vector<64x4xbf16>
    tpu.vector_store %arg9[%c0_33, %c20], %42 {strides = array<i32>} : memref<64x128xbf16, #tpu.memory_space<vmem>>, vector<64x4xbf16>,
    %c8_i32_34 = arith.constant 8 : i32
    %44 = arith.muli %arg1, %c8_i32_34 : i32
    %c0_i32_35 = arith.constant 0 : i32
    %45 = arith.addi %44, %c0_i32_35 : i32
    %c0_36 = arith.constant 0 : index
    %46 = arith.index_cast %45 : i32 to index
    %c1_37 = arith.constant 1 : index
    %c0_38 = arith.constant 0 : index
    %47 = vector.load %arg4[%c0_36, %46, %c1_37, %c0_38] : memref<1x9x9x4xbf16, #tpu.memory_space<vmem>>, vector<1x8x8x4xbf16>
    %48 = vector.shape_cast %47 : vector<1x8x8x4xbf16> to vector<8x8x4xbf16>
    %49 = vector.shape_cast %48 : vector<8x8x4xbf16> to vector<64x4xbf16>
    %c0_39 = arith.constant 0 : index
    %c24 = arith.constant 24 : index
    %50 = vector.load %arg9[%c0_39, %c24] : memref<64x128xbf16, #tpu.memory_space<vmem>>, vector<64x4xbf16>
    tpu.vector_store %arg9[%c0_39, %c24], %49 {strides = array<i32>} : memref<64x128xbf16, #tpu.memory_space<vmem>>, vector<64x4xbf16>,
    %c8_i32_40 = arith.constant 8 : i32
    %51 = arith.muli %arg1, %c8_i32_40 : i32
    %c0_i32_41 = arith.constant 0 : i32
    %52 = arith.addi %51, %c0_i32_41 : i32
    %c0_42 = arith.constant 0 : index
    %53 = arith.index_cast %52 : i32 to index
    %c1_43 = arith.constant 1 : index
    %c0_44 = arith.constant 0 : index
    %54 = vector.load %arg5[%c0_42, %53, %c1_43, %c0_44] : memref<1x9x9x4xbf16, #tpu.memory_space<vmem>>, vector<1x8x8x4xbf16>
    %55 = vector.shape_cast %54 : vector<1x8x8x4xbf16> to vector<8x8x4xbf16>
    %56 = vector.shape_cast %55 : vector<8x8x4xbf16> to vector<64x4xbf16>
    %c0_45 = arith.constant 0 : index
    %c28 = arith.constant 28 : index
    %57 = vector.load %arg9[%c0_45, %c28] : memref<64x128xbf16, #tpu.memory_space<vmem>>, vector<64x4xbf16>
    tpu.vector_store %arg9[%c0_45, %c28], %56 {strides = array<i32>} : memref<64x128xbf16, #tpu.memory_space<vmem>>, vector<64x4xbf16>,
    %c8_i32_46 = arith.constant 8 : i32
    %58 = arith.muli %arg1, %c8_i32_46 : i32
    %c1_i32 = arith.constant 1 : i32
    %59 = arith.addi %58, %c1_i32 : i32
    %c0_47 = arith.constant 0 : index
    %60 = arith.index_cast %59 : i32 to index
    %c0_48 = arith.constant 0 : index
    %c0_49 = arith.constant 0 : index
    %61 = vector.load %arg2[%c0_47, %60, %c0_48, %c0_49] : memref<1x9x9x4xbf16, #tpu.memory_space<vmem>>, vector<1x8x8x4xbf16>
    %62 = vector.shape_cast %61 : vector<1x8x8x4xbf16> to vector<8x8x4xbf16>
    %63 = vector.shape_cast %62 : vector<8x8x4xbf16> to vector<64x4xbf16>
    %c0_50 = arith.constant 0 : index
    %c32 = arith.constant 32 : index
    %64 = vector.load %arg9[%c0_50, %c32] : memref<64x128xbf16, #tpu.memory_space<vmem>>, vector<64x4xbf16>
    tpu.vector_store %arg9[%c0_50, %c32], %63 {strides = array<i32>} : memref<64x128xbf16, #tpu.memory_space<vmem>>, vector<64x4xbf16>,
    %c8_i32_51 = arith.constant 8 : i32
    %65 = arith.muli %arg1, %c8_i32_51 : i32
    %c1_i32_52 = arith.constant 1 : i32
    %66 = arith.addi %65, %c1_i32_52 : i32
    %c0_53 = arith.constant 0 : index
    %67 = arith.index_cast %66 : i32 to index
    %c0_54 = arith.constant 0 : index
    %c0_55 = arith.constant 0 : index
    %68 = vector.load %arg3[%c0_53, %67, %c0_54, %c0_55] : memref<1x9x9x4xbf16, #tpu.memory_space<vmem>>, vector<1x8x8x4xbf16>
    %69 = vector.shape_cast %68 : vector<1x8x8x4xbf16> to vector<8x8x4xbf16>
    %70 = vector.shape_cast %69 : vector<8x8x4xbf16> to vector<64x4xbf16>
    %c0_56 = arith.constant 0 : index
    %c36 = arith.constant 36 : index
    %71 = vector.load %arg9[%c0_56, %c36] : memref<64x128xbf16, #tpu.memory_space<vmem>>, vector<64x4xbf16>
    tpu.vector_store %arg9[%c0_56, %c36], %70 {strides = array<i32>} : memref<64x128xbf16, #tpu.memory_space<vmem>>, vector<64x4xbf16>,
    %c8_i32_57 = arith.constant 8 : i32
    %72 = arith.muli %arg1, %c8_i32_57 : i32
    %c1_i32_58 = arith.constant 1 : i32
    %73 = arith.addi %72, %c1_i32_58 : i32
    %c0_59 = arith.constant 0 : index
    %74 = arith.index_cast %73 : i32 to index
    %c1_60 = arith.constant 1 : index
    %c0_61 = arith.constant 0 : index
    %75 = vector.load %arg2[%c0_59, %74, %c1_60, %c0_61] : memref<1x9x9x4xbf16, #tpu.memory_space<vmem>>, vector<1x8x8x4xbf16>
    %76 = vector.shape_cast %75 : vector<1x8x8x4xbf16> to vector<8x8x4xbf16>
    %77 = vector.shape_cast %76 : vector<8x8x4xbf16> to vector<64x4xbf16>
    %c0_62 = arith.constant 0 : index
    %c40 = arith.constant 40 : index
    %78 = vector.load %arg9[%c0_62, %c40] : memref<64x128xbf16, #tpu.memory_space<vmem>>, vector<64x4xbf16>
    tpu.vector_store %arg9[%c0_62, %c40], %77 {strides = array<i32>} : memref<64x128xbf16, #tpu.memory_space<vmem>>, vector<64x4xbf16>,
    %c8_i32_63 = arith.constant 8 : i32
    %79 = arith.muli %arg1, %c8_i32_63 : i32
    %c1_i32_64 = arith.constant 1 : i32
    %80 = arith.addi %79, %c1_i32_64 : i32
    %c0_65 = arith.constant 0 : index
    %81 = arith.index_cast %80 : i32 to index
    %c1_66 = arith.constant 1 : index
    %c0_67 = arith.constant 0 : index
    %82 = vector.load %arg3[%c0_65, %81, %c1_66, %c0_67] : memref<1x9x9x4xbf16, #tpu.memory_space<vmem>>, vector<1x8x8x4xbf16>
    %83 = vector.shape_cast %82 : vector<1x8x8x4xbf16> to vector<8x8x4xbf16>
    %84 = vector.shape_cast %83 : vector<8x8x4xbf16> to vector<64x4xbf16>
    %c0_68 = arith.constant 0 : index
    %c44 = arith.constant 44 : index
    %85 = vector.load %arg9[%c0_68, %c44] : memref<64x128xbf16, #tpu.memory_space<vmem>>, vector<64x4xbf16>
    tpu.vector_store %arg9[%c0_68, %c44], %84 {strides = array<i32>} : memref<64x128xbf16, #tpu.memory_space<vmem>>, vector<64x4xbf16>,
    %c8_i32_69 = arith.constant 8 : i32
    %86 = arith.muli %arg1, %c8_i32_69 : i32
    %c1_i32_70 = arith.constant 1 : i32
    %87 = arith.addi %86, %c1_i32_70 : i32
    %c0_71 = arith.constant 0 : index
    %88 = arith.index_cast %87 : i32 to index
    %c0_72 = arith.constant 0 : index
    %c0_73 = arith.constant 0 : index
    %89 = vector.load %arg4[%c0_71, %88, %c0_72, %c0_73] : memref<1x9x9x4xbf16, #tpu.memory_space<vmem>>, vector<1x8x8x4xbf16>
    %90 = vector.shape_cast %89 : vector<1x8x8x4xbf16> to vector<8x8x4xbf16>
    %91 = vector.shape_cast %90 : vector<8x8x4xbf16> to vector<64x4xbf16>
    %c0_74 = arith.constant 0 : index
    %c48 = arith.constant 48 : index
    %92 = vector.load %arg9[%c0_74, %c48] : memref<64x128xbf16, #tpu.memory_space<vmem>>, vector<64x4xbf16>
    tpu.vector_store %arg9[%c0_74, %c48], %91 {strides = array<i32>} : memref<64x128xbf16, #tpu.memory_space<vmem>>, vector<64x4xbf16>,
    %c8_i32_75 = arith.constant 8 : i32
    %93 = arith.muli %arg1, %c8_i32_75 : i32
    %c1_i32_76 = arith.constant 1 : i32
    %94 = arith.addi %93, %c1_i32_76 : i32
    %c0_77 = arith.constant 0 : index
    %95 = arith.index_cast %94 : i32 to index
    %c0_78 = arith.constant 0 : index
    %c0_79 = arith.constant 0 : index
    %96 = vector.load %arg5[%c0_77, %95, %c0_78, %c0_79] : memref<1x9x9x4xbf16, #tpu.memory_space<vmem>>, vector<1x8x8x4xbf16>
    %97 = vector.shape_cast %96 : vector<1x8x8x4xbf16> to vector<8x8x4xbf16>
    %98 = vector.shape_cast %97 : vector<8x8x4xbf16> to vector<64x4xbf16>
    %c0_80 = arith.constant 0 : index
    %c52 = arith.constant 52 : index
    %99 = vector.load %arg9[%c0_80, %c52] : memref<64x128xbf16, #tpu.memory_space<vmem>>, vector<64x4xbf16>
    tpu.vector_store %arg9[%c0_80, %c52], %98 {strides = array<i32>} : memref<64x128xbf16, #tpu.memory_space<vmem>>, vector<64x4xbf16>,
    %c8_i32_81 = arith.constant 8 : i32
    %100 = arith.muli %arg1, %c8_i32_81 : i32
    %c1_i32_82 = arith.constant 1 : i32
    %101 = arith.addi %100, %c1_i32_82 : i32
    %c0_83 = arith.constant 0 : index
    %102 = arith.index_cast %101 : i32 to index
    %c1_84 = arith.constant 1 : index
    %c0_85 = arith.constant 0 : index
    %103 = vector.load %arg4[%c0_83, %102, %c1_84, %c0_85] : memref<1x9x9x4xbf16, #tpu.memory_space<vmem>>, vector<1x8x8x4xbf16>
    %104 = vector.shape_cast %103 : vector<1x8x8x4xbf16> to vector<8x8x4xbf16>
    %105 = vector.shape_cast %104 : vector<8x8x4xbf16> to vector<64x4xbf16>
    %c0_86 = arith.constant 0 : index
    %c56 = arith.constant 56 : index
    %106 = vector.load %arg9[%c0_86, %c56] : memref<64x128xbf16, #tpu.memory_space<vmem>>, vector<64x4xbf16>
    tpu.vector_store %arg9[%c0_86, %c56], %105 {strides = array<i32>} : memref<64x128xbf16, #tpu.memory_space<vmem>>, vector<64x4xbf16>,
    %c8_i32_87 = arith.constant 8 : i32
    %107 = arith.muli %arg1, %c8_i32_87 : i32
    %c1_i32_88 = arith.constant 1 : i32
    %108 = arith.addi %107, %c1_i32_88 : i32
    %c0_89 = arith.constant 0 : index
    %109 = arith.index_cast %108 : i32 to index
    %c1_90 = arith.constant 1 : index
    %c0_91 = arith.constant 0 : index
    %110 = vector.load %arg5[%c0_89, %109, %c1_90, %c0_91] : memref<1x9x9x4xbf16, #tpu.memory_space<vmem>>, vector<1x8x8x4xbf16>
    %111 = vector.shape_cast %110 : vector<1x8x8x4xbf16> to vector<8x8x4xbf16>
    %112 = vector.shape_cast %111 : vector<8x8x4xbf16> to vector<64x4xbf16>
    %c0_92 = arith.constant 0 : index
    %c60 = arith.constant 60 : index
    %113 = vector.load %arg9[%c0_92, %c60] : memref<64x128xbf16, #tpu.memory_space<vmem>>, vector<64x4xbf16>
    tpu.vector_store %arg9[%c0_92, %c60], %112 {strides = array<i32>} : memref<64x128xbf16, #tpu.memory_space<vmem>>, vector<64x4xbf16>,
    %c0_93 = arith.constant 0 : index
    %c0_94 = arith.constant 0 : index
    %114 = vector.load %arg9[%c0_93, %c0_94] : memref<64x128xbf16, #tpu.memory_space<vmem>>, vector<64x128xbf16>
    %c0_95 = arith.constant 0 : index
    %c0_96 = arith.constant 0 : index
    %115 = vector.load %arg6[%c0_95, %c0_96] : memref<128x128xbf16, #tpu.memory_space<vmem>>, vector<128x128xbf16>
    %cst_97 = arith.constant dense<0.000000e+00> : vector<64x128xf32>
    %116 = tpu.matmul %114, %115, %cst_97 {dimension_numbers = #tpu.dot_dimension_numbers<[1], [0], [0], [1], [0, 0, 1, 1], [], []>} : vector<64x128xbf16>, vector<128x128xbf16>, vector<64x128xf32> -> vector<64x128xf32>
    %117 = vector.extract_strided_slice %116 {offsets = [0, 0], sizes = [64, 8], strides = [1, 1]} : vector<64x128xf32> to vector<64x8xf32>
    %c0_i32_98 = arith.constant 0 : i32
    %118 = arith.cmpi eq, %arg1, %c0_i32_98 : i32
    %119 = arith.extui %118 : i1 to i32
    %c0_i32_99 = arith.constant 0 : i32
    %120 = arith.cmpi ne, %119, %c0_i32_99 : i32
    scf.if %120 {
      %cst_118 = arith.constant 0.000000e+00 : f32
      %141 = vector.broadcast %cst_118 : f32 to vector<1x8x8xf32>
      %c0_119 = arith.constant 0 : index
      %c0_120 = arith.constant 0 : index
      %c0_121 = arith.constant 0 : index
      %142 = vector.load %arg8[%c0_119, %c0_120, %c0_121] : memref<1x8x8xf32, #tpu.memory_space<vmem>>, vector<1x8x8xf32>
      tpu.vector_store %arg8[%c0_119, %c0_120, %c0_121], %141 {strides = array<i32>} : memref<1x8x8xf32, #tpu.memory_space<vmem>>, vector<1x8x8xf32>,
    } else {
    }
    %c0_100 = arith.constant 0 : index
    %c0_101 = arith.constant 0 : index
    %c0_102 = arith.constant 0 : index
    %121 = vector.load %arg8[%c0_100, %c0_101, %c0_102] : memref<1x8x8xf32, #tpu.memory_space<vmem>>, vector<1x1x8xf32>
    %122 = vector.shape_cast %121 : vector<1x1x8xf32> to vector<1x8xf32>
    %cst_103 = arith.constant dense<0.000000e+00> : vector<8xf32>
    %123 = vector.multi_reduction <add>, %117, %cst_103 [0] : vector<64x8xf32> to vector<8xf32>
    %124 = vector.shape_cast %123 : vector<8xf32> to vector<1x8xf32>
    %125 = arith.addf %122, %124 : vector<1x8xf32>
    %c0_104 = arith.constant 0 : index
    %c0_105 = arith.constant 0 : index
    %c0_106 = arith.constant 0 : index
    %126 = vector.load %arg8[%c0_104, %c0_105, %c0_106] : memref<1x8x8xf32, #tpu.memory_space<vmem>>, vector<1x1x8xf32>
    %127 = vector.shape_cast %126 : vector<1x1x8xf32> to vector<1x8xf32>
    %128 = vector.shape_cast %125 : vector<1x8xf32> to vector<1x1x8xf32>
    tpu.vector_store %arg8[%c0_104, %c0_105, %c0_106], %128 {strides = array<i32>} : memref<1x8x8xf32, #tpu.memory_space<vmem>>, vector<1x1x8xf32>,
    %c0_107 = arith.constant 0 : index
    %c1_108 = arith.constant 1 : index
    %c0_109 = arith.constant 0 : index
    %129 = vector.load %arg8[%c0_107, %c1_108, %c0_109] : memref<1x8x8xf32, #tpu.memory_space<vmem>>, vector<1x1x8xf32>
    %130 = vector.shape_cast %129 : vector<1x1x8xf32> to vector<1x8xf32>
    %131 = arith.mulf %117, %117 : vector<64x8xf32>
    %cst_110 = arith.constant dense<0.000000e+00> : vector<8xf32>
    %132 = vector.multi_reduction <add>, %131, %cst_110 [0] : vector<64x8xf32> to vector<8xf32>
    %133 = vector.shape_cast %132 : vector<8xf32> to vector<1x8xf32>
    %134 = arith.addf %130, %133 : vector<1x8xf32>
    %c0_111 = arith.constant 0 : index
    %c1_112 = arith.constant 1 : index
    %c0_113 = arith.constant 0 : index
    %135 = vector.load %arg8[%c0_111, %c1_112, %c0_113] : memref<1x8x8xf32, #tpu.memory_space<vmem>>, vector<1x1x8xf32>
    %136 = vector.shape_cast %135 : vector<1x1x8xf32> to vector<1x8xf32>
    %137 = vector.shape_cast %134 : vector<1x8xf32> to vector<1x1x8xf32>
    tpu.vector_store %arg8[%c0_111, %c1_112, %c0_113], %137 {strides = array<i32>} : memref<1x8x8xf32, #tpu.memory_space<vmem>>, vector<1x1x8xf32>,
    %138 = vector.shape_cast %117 : vector<64x8xf32> to vector<1x8x8x8xf32>
    %139 = arith.truncf %138 : vector<1x8x8x8xf32> to vector<1x8x8x8xbf16>
    %c0_114 = arith.constant 0 : index
    %c0_115 = arith.constant 0 : index
    %c0_116 = arith.constant 0 : index
    %c0_117 = arith.constant 0 : index
    %140 = vector.load %arg7[%c0_114, %c0_115, %c0_116, %c0_117] : memref<1x8x8x8xbf16, #tpu.memory_space<vmem>>, vector<1x8x8x8xbf16>
    tpu.vector_store %arg7[%c0_114, %c0_115, %c0_116, %c0_117], %139 {strides = array<i32>} : memref<1x8x8x8xbf16, #tpu.memory_space<vmem>>, vector<1x8x8x8xbf16>,
    return
  }
  func.func @transform_0(%arg0: i32, %arg1: i32) -> (i32, i32, i32, i32) {
    %c0_i32 = arith.constant 0 : i32
    %c0_i32_0 = arith.constant 0 : i32
    %c0_i32_1 = arith.constant 0 : i32
    %c0_i32_2 = arith.constant 0 : i32
    return %arg0, %c0_i32, %c0_i32_0, %c0_i32_1 : i32, i32, i32, i32
  }
  func.func @transform_1(%arg0: i32, %arg1: i32) -> (i32, i32, i32, i32) {
    %c0_i32 = arith.constant 0 : i32
    %c0_i32_0 = arith.constant 0 : i32
    %c0_i32_1 = arith.constant 0 : i32
    %c0_i32_2 = arith.constant 0 : i32
    return %arg0, %c0_i32, %c0_i32_0, %c0_i32_1 : i32, i32, i32, i32
  }
  func.func @transform_2(%arg0: i32, %arg1: i32) -> (i32, i32, i32, i32) {
    %c0_i32 = arith.constant 0 : i32
    %c0_i32_0 = arith.constant 0 : i32
    %c0_i32_1 = arith.constant 0 : i32
    %c0_i32_2 = arith.constant 0 : i32
    return %arg0, %c0_i32, %c0_i32_0, %c0_i32_1 : i32, i32, i32, i32
  }
  func.func @transform_3(%arg0: i32, %arg1: i32) -> (i32, i32, i32, i32) {
    %c0_i32 = arith.constant 0 : i32
    %c0_i32_0 = arith.constant 0 : i32
    %c0_i32_1 = arith.constant 0 : i32
    %c0_i32_2 = arith.constant 0 : i32
    return %arg0, %c0_i32, %c0_i32_0, %c0_i32_1 : i32, i32, i32, i32
  }
  func.func @transform_4(%arg0: i32, %arg1: i32) -> (i32, i32) {
    %c0_i32 = arith.constant 0 : i32
    %c0_i32_0 = arith.constant 0 : i32
    %c0_i32_1 = arith.constant 0 : i32
    return %c0_i32, %c0_i32_0 : i32, i32
  }
  func.func @transform_5(%arg0: i32, %arg1: i32) -> (i32, i32, i32, i32) {
    %c0_i32 = arith.constant 0 : i32
    %c0_i32_0 = arith.constant 0 : i32
    %c0_i32_1 = arith.constant 0 : i32
    return %arg0, %arg1, %c0_i32, %c0_i32_0 : i32, i32, i32, i32
  }
  func.func @transform_6(%arg0: i32, %arg1: i32) -> (i32, i32, i32) {
    %c0_i32 = arith.constant 0 : i32
    %c0_i32_0 = arith.constant 0 : i32
    %c0_i32_1 = arith.constant 0 : i32
    return %arg0, %c0_i32, %c0_i32_0 : i32, i32, i32
  }
}

</mosaic_0001>

<bundles_post_ra>
// kernel: down_block.3
= control target key start
LH: loop header
LB: loop body
LE: loop exit
PB: predicated region body
PF: predicated region fallthrough
CT: control target
= control target key end

     0   :  { %s478_s12 = smov 0   ;;  %s480_s13 = smov 0   ;;  %s539_s0 = inlined_call_operand.vmem [shape: bf16[2,8,8,8], index: 0, kind: input, shape index: {}]   ;;  %s540_s1 = inlined_call_operand.vmem [shape: f32[1,8], index: 1, kind: input, shape index: {}]   ;;  %s541_s2 = inlined_call_operand.vmem [shape: f32[1,8], index: 2, kind: input, shape index: {}]   ;;  %s542_s3 = inlined_call_operand.vmem [shape: f32[2,8,8,8], index: 3, kind: output, shape index: {}]  }
   0x1   :  { %s482_s14 = smov 0  }
   0x2 LB: > { %s25_s15 = sadd.s32 1, %s452_s13  ;;  %p380_p0 = scmp.ge.s32.totalorder %s456_s14, 1  ;;  %s456_s14 = sphi %s482_s14, %s13_s14   ;;  %s452_s13 = sphi %s480_s13, %s544_s13   ;;  %s448_s12 = sphi %s478_s12, %s543_s12  }
   0x3   : > { %p27_p1 = scmp.ge.s32.totalorder %s25_s15, 2  ;;  %p158_p2 = scmp.lt.s32.totalorder %s456_s14, 3 }
   0x5   : > { %s546_s15 = smov (%p27_p1, %s25_s15), 0  ;;  %p159_p3 = pnand %p380_p0, %p158_p2 }
   0x6   : > { %p191_p4 = scmp.lt.s32.totalorder (!%p159_p3), %s448_s12, 1  ;;  %v385_v0 = vld [vmem:[%s540_s1] ss:$0 sm:$0xff] (!%p159_p3)  ;;  %vm280_vm0 = vcmask (!%p159_p3), 64512  }
   0x7   : > { %162 = sbr.rel (%p159_p3) target bundleno = 33 (0x21), region = 32  ;;  %v386_v9 = vld [vmem:[%s541_s2] ss:$0 sm:$0xff] (!%p159_p3) }
   0xe   : > { %s548_s12 = smov (!%p191_p4, %s448_s12), 1 }
   0xf   : > { %s389_s16 = sshll.u32 %s548_s12, 5  ;;  %s390_s24 = sshll.u32 %s548_s12, 6 }
  0x10   : > { %s198_s19 = scalar_lea.vmem %s539_s0, %s389_s16  ;;  %s512_s27 = scalar_lea.vmem %s542_s3, %s390_s24 }
  0x11   : > { %v392_v1 = vld [vmem:[%s198_s19] sm:$0xff]   ;;  %v407_v2 = vld [vmem:[%s198_s19 + $0x8] sm:$0xff]   ;;  %v408_v3 = vld [vmem:[%s198_s19 + $0x10] sm:$0xff]  }
  0x12   : > { %v393_v4 = vunpack.c.l.bf16 %v392_v1  ;;  %v394_v5 = vunpack.c.h.bf16 %v392_v1  ;;  %v397_v6 = vunpack.c.l.bf16 %v407_v2  ;;  %v398_v7 = vunpack.c.h.bf16 %v407_v2  ;;  %v409_v8 = vld [vmem:[%s198_s19 + $0x18] sm:$0xff]  }
  0x13   : > { %v401_v10 = vunpack.c.l.bf16 %v408_v3  ;;  %v402_v11 = vunpack.c.h.bf16 %v408_v3  ;;  %v405_v12 = vunpack.c.l.bf16 %v409_v8  ;;  %v406_v13 = vunpack.c.h.bf16 %v409_v8 }
  0x14   : > { %v234_v14 = vmul.f32 %v393_v4, %v385_v0  ;;  %v235_v15 = vmul.f32 %v394_v5, %v385_v0  ;;  %v236_v16 = vmul.f32 %v397_v6, %v385_v0  ;;  %v237_v17 = vmul.f32 %v398_v7, %v385_v0 }
  0x15   : > { %v238_v18 = vmul.f32 %v401_v10, %v385_v0  ;;  %v239_v19 = vmul.f32 %v402_v11, %v385_v0  ;;  %v240_v20 = vmul.f32 %v405_v12, %v385_v0  ;;  %v241_v21 = vmul.f32 %v406_v13, %v385_v0 }
  0x16   : > { %v248_v22 = vadd.f32 %v386_v9, %v234_v14  ;;  %v249_v23 = vadd.f32 %v386_v9, %v235_v15  ;;  %v250_v24 = vadd.f32 %v386_v9, %v236_v16  ;;  %v251_v25 = vadd.f32 %v386_v9, %v237_v17 }
  0x17   : > { %v252_v26 = vadd.f32 %v386_v9, %v238_v18  ;;  %v253_v27 = vadd.f32 %v386_v9, %v239_v19  ;;  %v254_v28 = vadd.f32 %v386_v9, %v240_v20  ;;  %v255_v29 = vadd.f32 %v386_v9, %v241_v21 }
  0x18   : > { %vm256_vm1 = vcmp.ge.f32.partialorder %v248_v22, 0.0  ;;  %v264_v30 = vmul.f32 0.2, %v248_v22  ;;  %vm257_vm2 = vcmp.ge.f32.partialorder %v249_v23, 0.0  ;;  %v265_v31 = vmul.f32 0.2, %v249_v23 }
  0x19   : > { %vm258_vm3 = vcmp.ge.f32.partialorder %v250_v24, 0.0  ;;  %v266_v32 = vmul.f32 0.2, %v250_v24  ;;  %vm259_vm4 = vcmp.ge.f32.partialorder %v251_v25, 0.0  ;;  %v267_v33 = vmul.f32 0.2, %v251_v25 }
  0x1a   : > { %v272_v34 = vsel %vm256_vm1, %v248_v22, %v264_v30  ;;  %v273_v35 = vsel %vm257_vm2, %v249_v23, %v265_v31  ;;  %vm260_vm5 = vcmp.ge.f32.partialorder %v252_v26, 0.0  ;;  %v268_v36 = vmul.f32 0.2, %v252_v26 }
  0x1b   : > { %281 = vst.msk [vmem:[%s512_s27] sm:$0xff] %vm280_vm0, %v272_v34  ;;  %282 = vst.msk [vmem:[%s512_s27 + $0x8] sm:$0xff] %vm280_vm0, %v273_v35  ;;  %v274_v37 = vsel %vm258_vm3, %v250_v24, %v266_v32  ;;  %v275_v38 = vsel %vm259_vm4, %v251_v25, %v267_v33  ;;  %vm261_vm6 = vcmp.ge.f32.partialorder %v253_v27, 0.0  ;;  %v269_v39 = vmul.f32 0.2, %v253_v27 }
  0x1c   : > { %283 = vst.msk [vmem:[%s512_s27 + $0x10] sm:$0xff] %vm280_vm0, %v274_v37  ;;  %284 = vst.msk [vmem:[%s512_s27 + $0x18] sm:$0xff] %vm280_vm0, %v275_v38  ;;  %v276_v40 = vsel %vm260_vm5, %v252_v26, %v268_v36  ;;  %vm262_vm7 = vcmp.ge.f32.partialorder %v254_v28, 0.0  ;;  %v270_v41 = vmul.f32 0.2, %v254_v28  ;;  %vm263_vm8 = vcmp.ge.f32.partialorder %v255_v29, 0.0 }
  0x1d   : > { %285 = vst.msk [vmem:[%s512_s27 + $0x20] sm:$0xff] %vm280_vm0, %v276_v40  ;;  %v277_v42 = vsel %vm261_vm6, %v253_v27, %v269_v39  ;;  %v271_v43 = vmul.f32 0.2, %v255_v29 }
  0x1e   : > { %286 = vst.msk [vmem:[%s512_s27 + $0x28] sm:$0xff] %vm280_vm0, %v277_v42  ;;  %v278_v44 = vsel %vm262_vm7, %v254_v28, %v270_v41 }
  0x1f   : > { %287 = vst.msk [vmem:[%s512_s27 + $0x30] sm:$0xff] %vm280_vm0, %v278_v44  ;;  %v279_v45 = vsel %vm263_vm8, %v255_v29, %v271_v43 }
  0x20   : > { %288 = vst.msk [vmem:[%s512_s27 + $0x38] sm:$0xff] %vm280_vm0, %v279_v45 }
  0x21 PF: > { %s13_s14 = sadd.s32 1, %s456_s14   ;;  %s543_s12 = smov %s452_s13 }
  0x22   : > { %p10_p5 = scmp.ge.s32.totalorder %s13_s14, 4   ;;  %s544_s13 = smov %s546_s15 }
  0x24   :  { %12 = sbr.rel (!%p10_p5) target bundleno = 2 (0x2), region = 62 }

// kernel: down_block.2
= control target key start
LH: loop header
LB: loop body
LE: loop exit
PB: predicated region body
PF: predicated region fallthrough
CT: control target
= control target key end

     0   :  { %s2762_s21 = smov 0   ;;  %s2764_s22 = smov 0   ;;  %s3337_s0 = inlined_call_operand.vmem [shape: bf16[2,9,9,4], index: 0, kind: input, shape index: {}]   ;;  %s3338_s1 = inlined_call_operand.vmem [shape: bf16[2,9,9,4], index: 1, kind: input, shape index: {}]   ;;  %s3339_s2 = inlined_call_operand.vmem [shape: bf16[2,9,9,4], index: 2, kind: input, shape index: {}]   ;;  %s3340_s3 = inlined_call_operand.vmem [shape: bf16[2,9,9,4], index: 3, kind: input, shape index: {}]   ;;  %s3341_s4 = inlined_call_operand.vmem [shape: bf16[128,128], index: 4, kind: input, shape index: {}]   ;;  %s3342_s5 = inlined_call_operand.vmem [shape: bf16[2,8,8,8], index: 5, kind: output, shape index: {0}]   ;;  %s3343_s6 = inlined_call_operand.vmem [shape: f32[2,8,8], index: 6, kind: output, shape index: {1}]  }
   0x1   :  { %s2766_s23 = smov 0  }
   0x2 LB: > { %s29_s24 = sadd.s32 1, %s2704_s22  ;;  %p2373_p0 = scmp.ge.s32.totalorder %s2708_s23, 1  ;;  %s2708_s23 = sphi %s2766_s23, %s17_s23   ;;  %s2704_s22 = sphi %s2764_s22, %s3347_s22   ;;  %s2700_s21 = sphi %s2762_s21, %s3346_s21  }
   0x3   : > { %p31_p1 = scmp.ge.s32.totalorder %s29_s24, 2  ;;  %p259_p2 = scmp.lt.s32.totalorder %s2708_s23, 3 }
   0x5   : > { %s3349_s24 = smov (%p31_p1, %s29_s24), 0  ;;  %p260_p3 = pnand %p2373_p0, %p259_p2 }
   0x6   : > { %p312_p4 = scmp.lt.s32.totalorder (!%p260_p3), %s2700_s21, 1  ;;  %vm456_vm0 = vsmask.f32 (!%p260_p3), 3328  ;;  %vm457_vm1 = vsmask.f32 (!%p260_p3), 7440  ;;  %s2710_s11 = smov (!%p260_p3), 4  }
   0x7   : > { %263 = sbr.rel (%p260_p3) target bundleno = 543 (0x21f), region = 40  ;;  %s2711_s15 = smov (!%p260_p3), 16   ;;  %vm2824_vm2 = vmor (!%p260_p3), %vm456_vm0, %vm457_vm1  ;;  %vm347_vm3 = vcmask (!%p260_p3), 1048064   ;;  %vm388_vm4 = vcmask (!%p260_p3), 31744   ;;  %vm435_vm5 = vcmask (!%p260_p3), 64544   ;;  %vm595_vm6 = vcmask (!%p260_p3), 97344  }
   0x8   : > { %s2712_s16 = smov (!%p260_p3), 20   ;;  %s2713_s17 = smov (!%p260_p3), 8   ;;  %vm752_vm7 = vcmask (!%p260_p3), 130144   ;;  %vm799_vm8 = vcmask (!%p260_p3), 162944   ;;  %vm846_vm9 = vcmask (!%p260_p3), 195744   ;;  %vm1003_vm10 = vcmask (!%p260_p3), 228544  }
   0x9   : > { %s2714_s18 = smov (!%p260_p3), 12   ;;  %s2715_s19 = smov (!%p260_p3), 24   ;;  %vm1160_vm11 = vcmask (!%p260_p3), 261344   ;;  %vm1209_vm12 = vcmask (!%p260_p3), 294144   ;;  %vm1256_vm13 = vcmask (!%p260_p3), 326944   ;;  %vm1413_vm14 = vcmask (!%p260_p3), 359744  }
   0xa   : > { %s2716_s20 = smov (!%p260_p3), 28   ;;  %s2718_s26 = smov (!%p260_p3), 36   ;;  %vm1570_vm15 = vcmask (!%p260_p3), 392544   ;;  %vm1617_vm0 = vcmask (!%p260_p3), 425344   ;;  %vm1664_vm1 = vcmask (!%p260_p3), 458144  }
   0xb   : > { %s2719_s27 = smov (!%p260_p3), 40   ;;  %s2720_s29 = smov (!%p260_p3), 44  }
   0xc   : > { %s2722_s30 = smov (!%p260_p3), 48   ;;  %s2723_s13 = smov (!%p260_p3), 52  }
   0xd   : > { %s2724_s9 = smov (!%p260_p3), 56  }
   0xe   : > { %s3351_s21 = smov (!%p312_p4, %s2700_s21), 1 }
   0xf   : > { %s2604_s25 = smul.u32 72, %s3351_s21 }
  0x11   : > { %s2786_s28 = scalar_lea.vmem %s3338_s1, %s2604_s25  ;;  %s2791_s7 = scalar_lea.vmem %s3339_s2, %s2604_s25 }
  0x12   : > { %v2646_v0 = vld [vmem:[%s2786_s28] ss:$8 sps:$4 sm:$0xff]   ;;  %s2797_s10 = scalar_lea.vmem %s3340_s3, %s2604_s25  ;;  %v2647_v1 = vld [vmem:[%s2791_s7 + $0x10] ss:$8 sps:$4 sm:$0xff]   ;;  %s2805_s14 = scalar_lea.vmem %s3337_s0, %s2604_s25  ;;  %v601_v39 = vld [vmem:[%s2786_s28 + $0x4] sm:$0x1] }
  0x13   : > { %423 = vrot.lane.b32.xlu0 %v2646_v0, %s2710_s11  ;;  %v2648_v2 = vld [vmem:[%s2786_s28 + $0x10] ss:$8 sps:$4 sm:$0xff]   ;;  %789 = vrot.lane.b32.xlu1 %v2647_v1, %s2711_s15  ;;  %v2650_v4 = vld [vmem:[%s2791_s7] ss:$8 sps:$4 sm:$0xff]   ;;  %v626_v53 = vshll.u32 %v601_v39, 16  ;;  %s2717_s25 = smov 32  }
  0x14   : > { %v2649_v3 = vld [vmem:[%s2797_s10 + $0x10] ss:$8 sps:$4 sm:$0xff]   ;;  %v440_v5 = vld [vmem:[%s2805_s14] sm:$0xf]  ;;  %v441_v6 = vld [vmem:[%s2805_s14 + $0x4] sm:$0x1] }
  0x15   : > { %v442_v7 = vld [vmem:[%s2805_s14 + $0x8] sm:$0xf]  ;;  %v443_v8 = vld [vmem:[%s2805_s14 + $0xc] sm:$0x1]  ;;  %v460_v9 = vshrl.u32 %v440_v5, 16  ;;  %v463_v10 = vshll.u32 %v440_v5, 16 }
  0x16   : > { %v469_v11 = vshll.u32 %v441_v6, 16  ;;  %v474_v12 = vshrl.u32 %v442_v7, 16  ;;  %v477_v13 = vshll.u32 %v442_v7, 16  ;;  %v483_v14 = vshll.u32 %v443_v8, 16  ;;  %v2651_v19 = vld [vmem:[%s2797_s10] ss:$8 sps:$4 sm:$0xff]  }
  0x17   : > { %425 = vrot.lane.b32.xlu0 %v2648_v2, %s2710_s11  ;;  %836 = vrot.lane.b32.xlu1 %v2649_v3, %s2712_s16  ;;  %v462_v15 = vrot.slane %v460_v9, 4  ;;  %v465_v16 = vrot.slane %v463_v10, 5  ;;  %v444_v22 = vld [vmem:[%s2805_s14 + $0x10] sm:$0xf]  ;;  %v445_v23 = vld [vmem:[%s2805_s14 + $0x14] sm:$0x1] }
  0x18   : > { %v471_v17 = vrot.slane %v469_v11, 5  ;;  %v476_v18 = vrot.slane %v474_v12, 4  ;;  %v479_v20 = vrot.slane %v477_v13, 5  ;;  %v485_v21 = vrot.slane %v483_v14, 5  ;;  %v446_v25 = vld [vmem:[%s2805_s14 + $0x18] sm:$0xf] }
  0x19   : > { %v466_v24 = vor.u32 %v465_v16, %v462_v15  ;;  %v447_v26 = vld [vmem:[%s2805_s14 + $0x1c] sm:$0x1]  ;;  %v488_v27 = vshrl.u32 %v444_v22, 16  ;;  %v491_v28 = vshll.u32 %v444_v22, 16  ;;  %v497_v31 = vshll.u32 %v445_v23, 16 }
  0x1a   : > { %v480_v30 = vor.u32 %v479_v20, %v476_v18  ;;  %v502_v32 = vshrl.u32 %v446_v25, 16  ;;  %v505_v33 = vshll.u32 %v446_v25, 16  ;;  %v600_v34 = vld [vmem:[%s2786_s28] sm:$0xf]  ;;  %v511_v38 = vshll.u32 %v447_v26, 16 }
  0x1b   : > { %787 = vrot.lane.b32.xlu0 %v2650_v4, %s2711_s15  ;;  %v467_v35 = vrot.slane %v466_v24, 4  ;;  %v490_v36 = vrot.slane %v488_v27, 4  ;;  %v493_v37 = vrot.slane %v491_v28, 5  ;;  %v499_v41 = vrot.slane %v497_v31, 5  ;;  %v602_v44 = vld [vmem:[%s2786_s28 + $0x8] sm:$0xf] }
  0x1c   : > { %v481_v40 = vrot.slane %v480_v30, 4  ;;  %v504_v42 = vrot.slane %v502_v32, 4  ;;  %v507_v43 = vrot.slane %v505_v33, 5  ;;  %v513_v47 = vrot.slane %v511_v38, 5  ;;  %v603_v51 = vld [vmem:[%s2786_s28 + $0xc] sm:$0x1] }
  0x1d   : > { %v472_v45 = vsel %vm2824_vm2, %v467_v35, %v471_v17  ;;  %v494_v46 = vor.u32 %v493_v37, %v490_v36  ;;  %v617_v48 = vshrl.u32 %v600_v34, 16  ;;  %v620_v52 = vshll.u32 %v600_v34, 16  ;;  %v604_v54 = vld [vmem:[%s2786_s28 + $0x10] sm:$0xf]  ;;  %v605_v63 = vld [vmem:[%s2786_s28 + $0x14] sm:$0x1] }
  0x1e   : > { %v486_v49 = vsel %vm2824_vm2, %v481_v40, %v485_v21  ;;  %v508_v50 = vor.u32 %v507_v43, %v504_v42  ;;  %v631_v58 = vshrl.u32 %v602_v44, 16  ;;  %v628_v61 = vrot.slane %v626_v53, 5  ;;  %v606_v3 = vld [vmem:[%s2786_s28 + $0x18] sm:$0xf]  ;;  %v607_v8 = vld [vmem:[%s2786_s28 + $0x1c] sm:$0x1] }
  0x1f   : > { %834 = vrot.lane.b32.xlu0 %v2651_v19, %s2712_s16  ;;  %v2389_v55 = vcombine.low %v472_v45, %v486_v49  ;;  %v495_v56 = vrot.slane %v494_v46, 4  ;;  %v619_v57 = vrot.slane %v617_v48, 4  ;;  %v622_v60 = vrot.slane %v620_v52, 5  ;;  %v851_v10 = vld [vmem:[%s2791_s7] sm:$0xf] }
  0x20   : > { %v509_v59 = vrot.slane %v508_v50, 4  ;;  %v634_v62 = vshll.u32 %v602_v44, 16  ;;  %v633_v1 = vrot.slane %v631_v58, 4  ;;  %v640_v2 = vshll.u32 %v603_v51, 16  ;;  %v852_v19 = vld [vmem:[%s2791_s7 + $0x4] sm:$0x1] }
  0x21   : > { %583 = vrot.lane.b32.xlu1 %v2389_v55, %s2713_s17  ;;  %v500_v0 = vsel %vm2824_vm2, %v495_v56, %v499_v41  ;;  %v645_v4 = vshrl.u32 %v604_v54, 16  ;;  %v623_v6 = vor.u32 %v622_v60, %v619_v57  ;;  %v648_v9 = vshll.u32 %v604_v54, 16  ;;  %v853_v23 = vld [vmem:[%s2791_s7 + $0x8] sm:$0xf]  ;;  %v854_v32 = vld [vmem:[%s2791_s7 + $0xc] sm:$0x1] }
  0x22   : > { %v514_v5 = vsel %vm2824_vm2, %v509_v59, %v513_v47  ;;  %v636_v7 = vrot.slane %v634_v62, 5  ;;  %v642_v12 = vrot.slane %v640_v2, 5  ;;  %v654_v14 = vshll.u32 %v605_v63, 16  ;;  %v855_v39 = vld [vmem:[%s2791_s7 + $0x10] sm:$0xf] }
  0x23   : > { %v2390_v11 = vcombine.low %v500_v0, %v514_v5  ;;  %v647_v13 = vrot.slane %v645_v4, 4  ;;  %v624_v15 = vrot.slane %v623_v6, 4  ;;  %v650_v17 = vrot.slane %v648_v9, 5  ;;  %v856_v44 = vld [vmem:[%s2791_s7 + $0x14] sm:$0x1] }
  0x24   : > { %v637_v16 = vor.u32 %v636_v7, %v633_v1  ;;  %v659_v18 = vshrl.u32 %v606_v3, 16  ;;  %v656_v20 = vrot.slane %v654_v14, 5  ;;  %v662_v21 = vshll.u32 %v606_v3, 16  ;;  %v857_v45 = vld [vmem:[%s2791_s7 + $0x18] sm:$0xf] }
  0x25   : > { %585 = vrot.lane.b32.xlu1 %v2390_v11, %s2713_s17  ;;  %v668_v22 = vshll.u32 %v607_v8, 16  ;;  %v868_v24 = vshrl.u32 %v851_v10, 16  ;;  %v629_v25 = vsel %vm2824_vm2, %v624_v15, %v628_v61  ;;  %v651_v27 = vor.u32 %v650_v17, %v647_v13  ;;  %v858_v50 = vld [vmem:[%s2791_s7 + $0x1c] sm:$0x1]  ;;  %v1008_v55 = vld [vmem:[%s2797_s10] sm:$0xf] }
  0x26   : > { %v638_v26 = vrot.slane %v637_v16, 4  ;;  %v661_v28 = vrot.slane %v659_v18, 4  ;;  %v664_v30 = vrot.slane %v662_v21, 5  ;;  %v871_v34 = vshll.u32 %v851_v10, 16  ;;  %v1009_v60 = vld [vmem:[%s2797_s10 + $0x4] sm:$0x1] }
  0x27   : > { %v670_v31 = vrot.slane %v668_v22, 5  ;;  %v870_v33 = vrot.slane %v868_v24, 4  ;;  %v652_v36 = vrot.slane %v651_v27, 4  ;;  %v877_v37 = vshll.u32 %v852_v19, 16  ;;  %v1010_v5 = vld [vmem:[%s2797_s10 + $0x8] sm:$0xf] }
  0x28   : > { %v643_v35 = vsel %vm2824_vm2, %v638_v26, %v642_v12  ;;  %v882_v38 = vshrl.u32 %v853_v23, 16  ;;  %v665_v41 = vor.u32 %v664_v30, %v661_v28  ;;  %v873_v42 = vrot.slane %v871_v34, 5  ;;  %v1011_v10 = vld [vmem:[%s2797_s10 + $0xc] sm:$0x1]  ;;  %v1012_v11 = vld [vmem:[%s2797_s10 + $0x10] sm:$0xf] }
  0x29   : > { %v2393_v40 = vcombine.low %v629_v25, %v643_v35  ;;  %v885_v43 = vshll.u32 %v853_v23, 16  ;;  %v657_v46 = vsel %vm2824_vm2, %v652_v36, %v656_v20  ;;  %v879_v47 = vrot.slane %v877_v37, 5  ;;  %v1013_v16 = vld [vmem:[%s2797_s10 + $0x14] sm:$0x1]  ;;  %v1014_v21 = vld [vmem:[%s2797_s10 + $0x18] sm:$0xf] }
  0x2a   : > { %v884_v48 = vrot.slane %v882_v38, 4  ;;  %v891_v49 = vshll.u32 %v854_v32, 16  ;;  %v666_v51 = vrot.slane %v665_v41, 4  ;;  %v874_v52 = vor.u32 %v873_v42, %v870_v33 }
  0x2b   : > { %740 = vrot.lane.b32.xlu0 %v2393_v40, %s2714_s18  ;;  %v887_v53 = vrot.slane %v885_v43, 5  ;;  %v896_v54 = vshrl.u32 %v855_v39, 16  ;;  %v899_v57 = vshll.u32 %v855_v39, 16  ;;  %v905_v58 = vshll.u32 %v856_v44, 16  ;;  %v1015_v40 = vld [vmem:[%s2797_s10 + $0x1c] sm:$0x1] }
  0x2c   : > { %v893_v56 = vrot.slane %v891_v49, 5  ;;  %v910_v59 = vshrl.u32 %v857_v45, 16  ;;  %v671_v61 = vsel %vm2824_vm2, %v666_v51, %v670_v31  ;;  %v875_v62 = vrot.slane %v874_v52, 4  ;;  %v448_v51 = vld [vmem:[%s2805_s14 + $0x20] sm:$0xf] }
  0x2d   : > { %v888_v63 = vor.u32 %v887_v53, %v884_v48  ;;  %v898_v0 = vrot.slane %v896_v54, 4  ;;  %v2394_v1 = vcombine.low %v657_v46, %v671_v61  ;;  %v901_v2 = vrot.slane %v899_v57, 5  ;;  %v450_v57 = vld [vmem:[%s2805_s14 + $0x28] sm:$0xf] }
  0x2e   : > { %v907_v3 = vrot.slane %v905_v58, 5  ;;  %v912_v4 = vrot.slane %v910_v59, 4  ;;  %v880_v6 = vsel %vm2824_vm2, %v875_v62, %v879_v47  ;;  %v913_v8 = vshll.u32 %v857_v45, 16  ;;  %v451_v59 = vld [vmem:[%s2805_s14 + $0x2c] sm:$0x1] }
  0x2f   : > { %v889_v7 = vrot.slane %v888_v63, 4  ;;  %v919_v9 = vshll.u32 %v858_v50, 16  ;;  %742 = vrot.lane.b32.xlu1 %v2394_v1, %s2714_s18  ;;  %v902_v12 = vor.u32 %v901_v2, %v898_v0  ;;  %v1025_v13 = vshrl.u32 %v1008_v55, 16 }
  0x30   : > { %v1028_v14 = vshll.u32 %v1008_v55, 16  ;;  %v1034_v15 = vshll.u32 %v1009_v60, 16  ;;  %v915_v18 = vrot.slane %v913_v8, 5  ;;  %v1039_v20 = vshrl.u32 %v1010_v5, 16 }
  0x31   : > { %v894_v17 = vsel %vm2824_vm2, %v889_v7, %v893_v56  ;;  %v921_v19 = vrot.slane %v919_v9, 5  ;;  %v903_v23 = vrot.slane %v902_v12, 4  ;;  %v1027_v24 = vrot.slane %v1025_v13, 4  ;;  %v449_v56 = vld [vmem:[%s2805_s14 + $0x24] sm:$0x1] }
  0x32   : > { %v2405_v22 = vcombine.low %v880_v6, %v894_v17  ;;  %v1030_v25 = vrot.slane %v1028_v14, 5  ;;  %v916_v26 = vor.u32 %v915_v18, %v912_v4  ;;  %v1036_v27 = vrot.slane %v1034_v15, 5  ;;  %v2439_v17 = vld [vmem:[%s2805_s14 + $0x10] sm:$0xf] }
  0x33   : > { %v1041_v28 = vrot.slane %v1039_v20, 4  ;;  %v1042_v30 = vshll.u32 %v1010_v5, 16  ;;  %v908_v31 = vsel %vm2824_vm2, %v903_v23, %v907_v3  ;;  %v1048_v33 = vshll.u32 %v1011_v10, 16  ;;  %v2652_v5 = vld [vmem:[%s2805_s14 + $0x8] ss:$8 sps:$4 sm:$0xff]  }
  0x34   : > { %991 = vrot.lane.b32.xlu0 %v2405_v22, %s2715_s19  ;;  %v1031_v32 = vor.u32 %v1030_v25, %v1027_v24  ;;  %v1053_v34 = vshrl.u32 %v1012_v11, 16  ;;  %v917_v35 = vrot.slane %v916_v26, 4  ;;  %v1056_v37 = vshll.u32 %v1012_v11, 16  ;;  %v2437_v11 = vld [vmem:[%s2805_s14 + $0x8] sm:$0xf] }
  0x35   : > { %v1044_v36 = vrot.slane %v1042_v30, 5  ;;  %v1062_v38 = vshll.u32 %v1013_v16, 16  ;;  %v1067_v42 = vshrl.u32 %v1014_v21, 16  ;;  %v1050_v45 = vrot.slane %v1048_v33, 5  ;;  %v2438_v16 = vld [vmem:[%s2805_s14 + $0xc] sm:$0x1] }
  0x36   : > { %v1032_v39 = vrot.slane %v1031_v32, 4  ;;  %v1055_v41 = vrot.slane %v1053_v34, 4  ;;  %v922_v43 = vsel %vm2824_vm2, %v917_v35, %v921_v19  ;;  %v1058_v46 = vrot.slane %v1056_v37, 5  ;;  %v2440_v19 = vld [vmem:[%s2805_s14 + $0x14] sm:$0x1] }
  0x37   : > { %v1045_v44 = vor.u32 %v1044_v36, %v1041_v28  ;;  %v2406_v47 = vcombine.low %v908_v31, %v922_v43  ;;  %v1064_v48 = vrot.slane %v1062_v38, 5  ;;  %v1069_v49 = vrot.slane %v1067_v42, 4  ;;  %v2654_v30 = vld [vmem:[%s2805_s14 + $0x18] ss:$8 sps:$4 sm:$0xff]  }
  0x38   : > { %v1070_v50 = vshll.u32 %v1014_v21, 16  ;;  %v1037_v52 = vsel %vm2824_vm2, %v1032_v39, %v1036_v27  ;;  %v1059_v54 = vor.u32 %v1058_v46, %v1055_v41  ;;  %v1076_v55 = vshll.u32 %v1015_v40, 16  ;;  %v452_v27 = vld [vmem:[%s2805_s14 + $0x30] sm:$0xf]  ;;  %v454_v34 = vld [vmem:[%s2805_s14 + $0x38] sm:$0xf] }
  0x39   : > { %v1046_v53 = vrot.slane %v1045_v44, 4  ;;  %993 = vrot.lane.b32.xlu1 %v2406_v47, %s2715_s19  ;;  %v516_v60 = vshrl.u32 %v448_v51, 16  ;;  %v519_v61 = vshll.u32 %v448_v51, 16  ;;  %v525_v62 = vshll.u32 %v449_v56, 16  ;;  %v453_v39 = vld [vmem:[%s2805_s14 + $0x34] sm:$0x1] }
  0x3a   : > { %v1072_v58 = vrot.slane %v1070_v50, 5  ;;  %v1060_v0 = vrot.slane %v1059_v54, 4  ;;  %v1078_v1 = vrot.slane %v1076_v55, 5  ;;  %v530_v2 = vshrl.u32 %v450_v57, 16  ;;  %v2653_v40 = vld [vmem:[%s2786_s28 + $0x20] ss:$8 sps:$4 sm:$0xff]  }
  0x3b   : > { %v1051_v63 = vsel %vm2824_vm2, %v1046_v53, %v1050_v45  ;;  %v518_v6 = vrot.slane %v516_v60, 4  ;;  %v521_v7 = vrot.slane %v519_v61, 5  ;;  %v527_v8 = vrot.slane %v525_v62, 5  ;;  %v2656_v45 = vld [vmem:[%s2786_s28 + $0x30] ss:$8 sps:$4 sm:$0xff]  }
  0x3c   : > { %v2409_v3 = vcombine.low %v1037_v52, %v1051_v63  ;;  %v1073_v4 = vor.u32 %v1072_v58, %v1069_v49  ;;  %v532_v9 = vrot.slane %v530_v2, 4  ;;  %v533_v10 = vshll.u32 %v450_v57, 16  ;;  %v455_v47 = vld [vmem:[%s2805_s14 + $0x3c] sm:$0x1]  ;;  %v608_v54 = vld [vmem:[%s2786_s28 + $0x20] sm:$0xf] }
  0x3d   : > { %v1065_v12 = vsel %vm2824_vm2, %v1060_v0, %v1064_v48  ;;  %v522_v14 = vor.u32 %v521_v7, %v518_v6  ;;  %v539_v15 = vshll.u32 %v451_v59, 16  ;;  %v1278_v20 = vshrl.u32 %v2437_v11, 16  ;;  %v609_v59 = vld [vmem:[%s2786_s28 + $0x24] sm:$0x1]  ;;  %v610_v60 = vld [vmem:[%s2786_s28 + $0x28] sm:$0xf] }
  0x3e   : > { %1148 = vrot.lane.b32.xlu0 %v2409_v3, %s2716_s20  ;;  %v1074_v13 = vrot.slane %v1073_v4, 4  ;;  %v535_v18 = vrot.slane %v533_v10, 5  ;;  %v1281_v21 = vshll.u32 %v2437_v11, 16  ;;  %v1287_v22 = vshll.u32 %v2438_v16, 16  ;;  %v2655_v61 = vld [vmem:[%s2786_s28 + $0x8] ss:$8 sps:$4 sm:$0xff]  }
  0x3f   : > { %v523_v24 = vrot.slane %v522_v14, 4  ;;  %v541_v25 = vrot.slane %v539_v15, 5  ;;  %v1292_v26 = vshrl.u32 %v2439_v17, 16  ;;  %v1280_v32 = vrot.slane %v1278_v20, 4  ;;  %v2657_v2 = vld [vmem:[%s2786_s28 + $0x18] ss:$8 sps:$4 sm:$0xff]  }
  0x40   : > { %v1079_v23 = vsel %vm2824_vm2, %v1074_v13, %v1078_v1  ;;  %v536_v31 = vor.u32 %v535_v18, %v532_v9  ;;  %v1283_v33 = vrot.slane %v1281_v21, 5  ;;  %v1289_v36 = vrot.slane %v1287_v22, 5  ;;  %v611_v9 = vld [vmem:[%s2786_s28 + $0x2c] sm:$0x1]  ;;  %v2441_v16 = vld [vmem:[%s2805_s14 + $0x18] sm:$0xf] }
  0x41   : > { %v2410_v28 = vcombine.low %v1065_v12, %v1079_v23  ;;  %v528_v35 = vsel %vm2824_vm2, %v523_v24, %v527_v8  ;;  %v1294_v37 = vrot.slane %v1292_v26, 4  ;;  %v1295_v38 = vshll.u32 %v2439_v17, 16  ;;  %v2442_v21 = vld [vmem:[%s2805_s14 + $0x1c] sm:$0x1]  ;;  %v2443_v22 = vld [vmem:[%s2805_s14 + $0x20] sm:$0xf] }
  0x42   : > { %1197 = vrot.lane.b32.xlu0 %v2652_v5, %s2717_s25  ;;  %v537_v41 = vrot.slane %v536_v31, 4  ;;  %v1284_v42 = vor.u32 %v1283_v33, %v1280_v32  ;;  %v1301_v43 = vshll.u32 %v2440_v19, 16  ;;  %v544_v44 = vshrl.u32 %v452_v27, 16  ;;  %v2457_v33 = vld [vmem:[%s2786_s28 + $0x8] sm:$0xf] }
  0x43   : > { %1150 = vrot.lane.b32.xlu1 %v2410_v28, %s2716_s20  ;;  %v1297_v46 = vrot.slane %v1295_v38, 5  ;;  %v547_v48 = vshll.u32 %v452_v27, 16  ;;  %v558_v49 = vshrl.u32 %v454_v34, 16  ;;  %v553_v53 = vshll.u32 %v453_v39, 16  ;;  %v2444_v27 = vld [vmem:[%s2805_s14 + $0x24] sm:$0x1] }
  0x44   : > { %v542_v50 = vsel %vm2824_vm2, %v537_v41, %v541_v25  ;;  %v1285_v51 = vrot.slane %v1284_v42, 4  ;;  %v546_v52 = vrot.slane %v544_v44, 4  ;;  %v1303_v57 = vrot.slane %v1301_v43, 5  ;;  %v2458_v38 = vld [vmem:[%s2786_s28 + $0xc] sm:$0x1] }
  0x45   : > { %v2391_v55 = vcombine.low %v528_v35, %v542_v50  ;;  %v1298_v56 = vor.u32 %v1297_v46, %v1294_v37  ;;  %v549_v58 = vrot.slane %v547_v48, 5  ;;  %v560_v63 = vrot.slane %v558_v49, 4  ;;  %v2459_v43 = vld [vmem:[%s2786_s28 + $0x10] sm:$0xf] }
  0x46   : > { %1199 = vrot.lane.b32.xlu0 %v2654_v30, %s2717_s25  ;;  %v1290_v62 = vsel %vm2824_vm2, %v1285_v51, %v1289_v36  ;;  %v561_v0 = vshll.u32 %v454_v34, 16  ;;  %v567_v1 = vshll.u32 %v455_v47, 16  ;;  %v673_v5 = vshrl.u32 %v608_v54, 16 }
  0x47   : > { %427 = vrot.lane.b32.xlu1 %v2653_v40, %s2710_s11  ;;  %v1299_v3 = vrot.slane %v1298_v56, 4  ;;  %v550_v4 = vor.u32 %v549_v58, %v546_v52  ;;  %v676_v6 = vshll.u32 %v608_v54, 16  ;;  %v555_v7 = vrot.slane %v553_v53, 5  ;;  %v2460_v53 = vld [vmem:[%s2786_s28 + $0x14] sm:$0x1] }
  0x48   : > { %v563_v8 = vrot.slane %v561_v0, 5  ;;  %v682_v10 = vshll.u32 %v609_v59, 16  ;;  %v687_v11 = vshrl.u32 %v610_v60, 16  ;;  %v675_v14 = vrot.slane %v673_v5, 4 }
  0x49   : > { %v1304_v12 = vsel %vm2824_vm2, %v1299_v3, %v1303_v57  ;;  %v551_v13 = vrot.slane %v550_v4, 4  ;;  %v678_v15 = vrot.slane %v676_v6, 5  ;;  %v569_v19 = vrot.slane %v567_v1, 5 }
  0x4a   : > { %429 = vrot.lane.b32.xlu0 %v2656_v45, %s2710_s11  ;;  %v2453_v17 = vcombine.low %v1290_v62, %v1304_v12  ;;  %v564_v18 = vor.u32 %v563_v8, %v560_v63  ;;  %v684_v20 = vrot.slane %v682_v10, 5  ;;  %v689_v24 = vrot.slane %v687_v11, 4  ;;  %v615_v10 = vld [vmem:[%s2786_s28 + $0x3c] sm:$0x1] }
  0x4b   : > { %1244 = vrot.lane.b32.xlu1 %v2655_v61, %s2718_s26  ;;  %v679_v23 = vor.u32 %v678_v15, %v675_v14  ;;  %v690_v25 = vshll.u32 %v610_v60, 16  ;;  %v696_v26 = vshll.u32 %v611_v9, 16  ;;  %v556_v28 = vsel %vm2824_vm2, %v551_v13, %v555_v7  ;;  %v612_v61 = vld [vmem:[%s2786_s28 + $0x30] sm:$0xf]  ;;  %v613_v7 = vld [vmem:[%s2786_s28 + $0x34] sm:$0x1] }
  0x4c   : > { %v565_v30 = vrot.slane %v564_v18, 4  ;;  %v1306_v31 = vshrl.u32 %v2441_v16, 16  ;;  %v1309_v32 = vshll.u32 %v2441_v16, 16  ;;  %v1315_v36 = vshll.u32 %v2442_v21, 16 }
  0x4d   : > { %v680_v34 = vrot.slane %v679_v23, 4  ;;  %v692_v35 = vrot.slane %v690_v25, 5  ;;  %v1320_v37 = vshrl.u32 %v2443_v22, 16  ;;  %v698_v40 = vrot.slane %v696_v26, 5 }
  0x4e   : > { %1246 = vrot.lane.b32.xlu0 %v2657_v2, %s2718_s26  ;;  %v570_v39 = vsel %vm2824_vm2, %v565_v30, %v569_v19  ;;  %v1308_v41 = vrot.slane %v1306_v31, 4  ;;  %v1311_v42 = vrot.slane %v1309_v32, 5  ;;  %v1323_v49 = vshll.u32 %v2443_v22, 16  ;;  %v614_v2 = vld [vmem:[%s2786_s28 + $0x38] sm:$0xf] }
  0x4f   : > { %587 = vrot.lane.b32.xlu1 %v2391_v55, %s2713_s17  ;;  %v2392_v44 = vcombine.low %v556_v28, %v570_v39  ;;  %v685_v45 = vsel %vm2824_vm2, %v680_v34, %v684_v20  ;;  %v693_v46 = vor.u32 %v692_v35, %v689_v24  ;;  %v1322_v47 = vrot.slane %v1320_v37, 4  ;;  %v2462_v22 = vld [vmem:[%s2786_s28 + $0x1c] sm:$0x1]  ;;  %v2464_v35 = vld [vmem:[%s2786_s28 + $0x24] sm:$0x1] }
  0x50   : > { %v1312_v48 = vor.u32 %v1311_v42, %v1308_v41  ;;  %v1329_v50 = vshll.u32 %v2444_v27, 16  ;;  %v1435_v51 = vshrl.u32 %v2457_v33, 16  ;;  %v1438_v54 = vshll.u32 %v2457_v33, 16  ;;  %v2463_v27 = vld [vmem:[%s2786_s28 + $0x20] sm:$0xf] }
  0x51   : > { %v694_v52 = vrot.slane %v693_v46, 4  ;;  %v1444_v55 = vshll.u32 %v2458_v38, 16  ;;  %v1449_v56 = vshrl.u32 %v2459_v43, 16  ;;  %v1317_v58 = vrot.slane %v1315_v36, 5 }
  0x52   : > { %589 = vrot.lane.b32.xlu0 %v2392_v44, %s2713_s17  ;;  %v1313_v57 = vrot.slane %v1312_v48, 4  ;;  %v1325_v59 = vrot.slane %v1323_v49, 5  ;;  %v1437_v60 = vrot.slane %v1435_v51, 4  ;;  %v1331_v63 = vrot.slane %v1329_v50, 5 }
  0x53   : > { %1401 = vrot.lane.b32.xlu1 %v2453_v17, %s2719_s27  ;;  %v699_v62 = vsel %vm2824_vm2, %v694_v52, %v698_v40  ;;  %v1440_v0 = vrot.slane %v1438_v54, 5  ;;  %v1446_v1 = vrot.slane %v1444_v55, 5  ;;  %v1451_v5 = vrot.slane %v1449_v56, 4  ;;  %v2461_v17 = vld [vmem:[%s2786_s28 + $0x18] sm:$0xf] }
  0x54   : > { %v2395_v3 = vcombine.low %v685_v45, %v699_v62  ;;  %v1326_v4 = vor.u32 %v1325_v59, %v1322_v47  ;;  %v1452_v6 = vshll.u32 %v2459_v43, 16  ;;  %v1458_v9 = vshll.u32 %v2460_v53, 16  ;;  %v2658_v55 = vld [vmem:[%s2791_s7 + $0x20] ss:$8 sps:$4 sm:$0xff]   ;;  %v860_v62 = vld [vmem:[%s2791_s7 + $0x24] sm:$0x1] }
  0x55   : > { %v1441_v8 = vor.u32 %v1440_v0, %v1437_v60  ;;  %v701_v11 = vshrl.u32 %v612_v61, 16  ;;  %v704_v12 = vshll.u32 %v612_v61, 16  ;;  %v1318_v13 = vsel %vm2824_vm2, %v1313_v57, %v1317_v58  ;;  %v2659_v60 = vld [vmem:[%s2791_s7 + $0x8] ss:$8 sps:$4 sm:$0xff]   ;;  %v859_v61 = vld [vmem:[%s2791_s7 + $0x20] sm:$0xf] }
  0x56   : > { %v1327_v14 = vrot.slane %v1326_v4, 4  ;;  %v1454_v15 = vrot.slane %v1452_v6, 5  ;;  %v715_v16 = vshrl.u32 %v614_v2, 16  ;;  %v710_v21 = vshll.u32 %v613_v7, 16  ;;  %v862_v4 = vld [vmem:[%s2791_s7 + $0x2c] sm:$0x1] }
  0x57   : > { %744 = vrot.lane.b32.xlu1 %v2395_v3, %s2714_s18  ;;  %v1442_v18 = vrot.slane %v1441_v8, 4  ;;  %v703_v19 = vrot.slane %v701_v11, 4  ;;  %v706_v20 = vrot.slane %v704_v12, 5  ;;  %v1460_v25 = vrot.slane %v1458_v9, 5  ;;  %v861_v3 = vld [vmem:[%s2791_s7 + $0x28] sm:$0xf] }
  0x58   : > { %v1332_v23 = vsel %vm2824_vm2, %v1327_v14, %v1331_v63  ;;  %v1455_v24 = vor.u32 %v1454_v15, %v1451_v5  ;;  %v717_v26 = vrot.slane %v715_v16, 4  ;;  %v718_v32 = vshll.u32 %v614_v2, 16  ;;  %v2661_v14 = vld [vmem:[%s2797_s10 + $0x20] ss:$8 sps:$4 sm:$0xff]  }
  0x59   : > { %v2454_v28 = vcombine.low %v1318_v13, %v1332_v23  ;;  %v1447_v30 = vsel %vm2824_vm2, %v1442_v18, %v1446_v1  ;;  %v707_v31 = vor.u32 %v706_v20, %v703_v19  ;;  %v724_v34 = vshll.u32 %v615_v10, 16 }
  0x5a   : > { %v1456_v33 = vrot.slane %v1455_v24, 4  ;;  %v1463_v36 = vshrl.u32 %v2461_v17, 16  ;;  %v1466_v37 = vshll.u32 %v2461_v17, 16  ;;  %v712_v39 = vrot.slane %v710_v21, 5  ;;  %v2501_v21 = vld [vmem:[%s2791_s7 + $0x8] sm:$0xf] }
  0x5b   : > { %1403 = vrot.lane.b32.xlu0 %v2454_v28, %s2719_s27  ;;  %v708_v38 = vrot.slane %v707_v31, 4  ;;  %v720_v40 = vrot.slane %v718_v32, 5  ;;  %v1477_v41 = vshrl.u32 %v2463_v27, 16  ;;  %v1472_v45 = vshll.u32 %v2462_v22, 16  ;;  %v2502_v22 = vld [vmem:[%s2791_s7 + $0xc] sm:$0x1] }
  0x5c   : > { %v1461_v42 = vsel %vm2824_vm2, %v1456_v33, %v1460_v25  ;;  %v1465_v43 = vrot.slane %v1463_v36, 4  ;;  %v1468_v44 = vrot.slane %v1466_v37, 5  ;;  %v726_v48 = vrot.slane %v724_v34, 5  ;;  %v2660_v24 = vld [vmem:[%s2791_s7 + $0x30] ss:$8 sps:$4 sm:$0xff]   ;;  %v2678_v31 = vld [vmem:[%s3341_s4] sm:$0xff]  }
  0x5d   : > { %v2473_v46 = vcombine.low %v1447_v30, %v1461_v42  ;;  %v721_v47 = vor.u32 %v720_v40, %v717_v26  ;;  %v1479_v50 = vrot.slane %v1477_v41, 4  ;;  %v1480_v51 = vshll.u32 %v2463_v27, 16  ;;  %v2503_v27 = vld [vmem:[%s2791_s7 + $0x10] sm:$0xf]  ;;  %v2504_v28 = vld [vmem:[%s2791_s7 + $0x14] sm:$0x1]  ;;  %2564 = vmatprep.subr.bf16.mxu0 %v2678_v31  ;;  %2588 = vmatprep.subr.bf16.mxu1 %v2678_v31 }
  0x5e   : > { %v1469_v49 = vor.u32 %v1468_v44, %v1465_v43  ;;  %v1486_v52 = vshll.u32 %v2464_v35, 16  ;;  %v713_v53 = vsel %vm2824_vm2, %v708_v38, %v712_v39  ;;  %v1474_v57 = vrot.slane %v1472_v45, 5  ;;  %v863_v36 = vld [vmem:[%s2791_s7 + $0x30] sm:$0xf]  ;;  %v864_v41 = vld [vmem:[%s2791_s7 + $0x34] sm:$0x1]  ;;  %2565 = vmatpush3.bf16.msra.mxu0 %v2678_v31  ;;  %2596 = vmatpush3.bf16.msra.mxu1 %v2678_v31 }
  0x5f   : > { %1558 = vrot.lane.b32.xlu1 %v2473_v46, %s2720_s29  ;;  %v722_v54 = vrot.slane %v721_v47, 4  ;;  %v1482_v58 = vrot.slane %v1480_v51, 5  ;;  %v2721_v63 = vmov 0   ;;  %v924_v5 = vshrl.u32 %v859_v61, 16  ;;  %v865_v46 = vld [vmem:[%s2791_s7 + $0x38] sm:$0xf] }
  0x60   : > { %v1470_v56 = vrot.slane %v1469_v49, 4  ;;  %348 = vst.msk [vmem:[#allocation2] sm:$0xff] %vm347_vm3, %v2721_v63  ;;  %349 = vst.msk [vmem:[#allocation2 + $0x8] sm:$0xff] %vm347_vm3, %v2721_v63  ;;  %v1488_v2 = vrot.slane %v1486_v52, 5  ;;  %v927_v6 = vshll.u32 %v859_v61, 16  ;;  %v933_v7 = vshll.u32 %v860_v62, 16 }
  0x61   : > { %v727_v59 = vsel %vm2824_vm2, %v722_v54, %v726_v48  ;;  %350 = vst.msk [vmem:[#allocation2 + $0x10] sm:$0xff] %vm347_vm3, %v2721_v63  ;;  %351 = vst.msk [vmem:[#allocation2 + $0x18] sm:$0xff] %vm347_vm3, %v2721_v63  ;;  %v1483_v1 = vor.u32 %v1482_v58, %v1479_v50  ;;  %v938_v8 = vshrl.u32 %v861_v3, 16  ;;  %v941_v9 = vshll.u32 %v861_v3, 16  ;;  %v2663_v47 = vld [vmem:[%s2797_s10 + $0x8] ss:$8 sps:$4 sm:$0xff]  }
  0x62   : > { %v2396_v0 = vcombine.low %v713_v53, %v727_v59  ;;  %v1475_v10 = vsel %vm2824_vm2, %v1470_v56, %v1474_v57  ;;  %v926_v12 = vrot.slane %v924_v5, 4  ;;  %v947_v13 = vshll.u32 %v862_v4, 16  ;;  %v866_v51 = vld [vmem:[%s2791_s7 + $0x3c] sm:$0x1]  ;;  %v1016_v57 = vld [vmem:[%s2797_s10 + $0x20] sm:$0xf] }
  0x63   : > { %791 = vrot.lane.b32.xlu1 %v2658_v55, %s2711_s15  ;;  %v1484_v11 = vrot.slane %v1483_v1, 4  ;;  %v929_v15 = vrot.slane %v927_v6, 5  ;;  %v940_v16 = vrot.slane %v938_v8, 4  ;;  %v943_v17 = vrot.slane %v941_v9, 5  ;;  %v2679_v58 = vld [vmem:[%s3341_s4 + $0x8] sm:$0xff]  }
  0x64   : > { %746 = vrot.lane.b32.xlu0 %v2396_v0, %s2714_s18  ;;  %v935_v19 = vrot.slane %v933_v7, 5  ;;  %v949_v20 = vrot.slane %v947_v13, 5  ;;  %v1686_v30 = vshrl.u32 %v2501_v21, 16  ;;  %v1689_v32 = vshll.u32 %v2501_v21, 16  ;;  %v2662_v59 = vld [vmem:[%s2791_s7 + $0x18] ss:$8 sps:$4 sm:$0xff]   ;;  %2566 = vmatprep.subr.bf16.mxu0 %v2679_v58 }
  0x65   : > { %v1489_v18 = vsel %vm2824_vm2, %v1484_v11, %v1488_v2  ;;  %v930_v25 = vor.u32 %v929_v15, %v926_v12  ;;  %v944_v26 = vor.u32 %v943_v17, %v940_v16  ;;  %v1695_v33 = vshll.u32 %v2502_v22, 16  ;;  %v1017_v4 = vld [vmem:[%s2797_s10 + $0x24] sm:$0x1]  ;;  %2589 = vmatprep.subr.bf16.mxu1 %v2679_v58  ;;  %v1018_v8 = vld [vmem:[%s2797_s10 + $0x28] sm:$0xf]  ;;  %2567 = vmatpush3.bf16.msra.mxu0 %v2679_v58  ;;  %v2680_v16 = vld [vmem:[%s3341_s4 + $0x10] sm:$0xff]  }
  0x66   : > { %v2474_v23 = vcombine.low %v1475_v10, %v1489_v18  ;;  %v1700_v34 = vshrl.u32 %v2503_v27, 16  ;;  %v1703_v35 = vshll.u32 %v2503_v27, 16  ;;  %v1688_v39 = vrot.slane %v1686_v30, 4  ;;  %v2505_v15 = vld [vmem:[%s2791_s7 + $0x18] sm:$0xf]  ;;  %2597 = vmatpush3.bf16.msra.mxu1 %v2679_v58  ;;  %2568 = vmatprep.subr.bf16.mxu0 %v2680_v16  ;;  %s2725_s18 = smov 60  }
  0x67   : > { %1605 = vrot.lane.b32.xlu1 %v2659_v60, %s2722_s30  ;;  %v931_v37 = vrot.slane %v930_v25, 4  ;;  %v945_v38 = vrot.slane %v944_v26, 4  ;;  %v1709_v40 = vshll.u32 %v2504_v28, 16  ;;  %v1691_v42 = vrot.slane %v1689_v32, 5  ;;  %v2664_v17 = vld [vmem:[%s2797_s10 + $0x30] ss:$8 sps:$4 sm:$0xff]   ;;  %2590 = vmatprep.subr.bf16.mxu1 %v2680_v16 }
  0x68   : > { %1560 = vrot.lane.b32.xlu0 %v2474_v23, %s2720_s29  ;;  %v1697_v43 = vrot.slane %v1695_v33, 5  ;;  %v1702_v44 = vrot.slane %v1700_v34, 4  ;;  %v1705_v45 = vrot.slane %v1703_v35, 5  ;;  %v952_v52 = vshrl.u32 %v863_v36, 16  ;;  %v2506_v26 = vld [vmem:[%s2791_s7 + $0x1c] sm:$0x1] }
  0x69   : > { %v936_v48 = vsel %vm2824_vm2, %v931_v37, %v935_v19  ;;  %v950_v49 = vsel %vm2824_vm2, %v945_v38, %v949_v20  ;;  %v1711_v50 = vrot.slane %v1709_v40, 5  ;;  %v1692_v54 = vor.u32 %v1691_v42, %v1688_v39  ;;  %v2507_v31 = vld [vmem:[%s2791_s7 + $0x20] sm:$0xf]  ;;  %2569 = vmatpush3.bf16.msra.mxu0 %v2680_v16  ;;  %v2508_v37 = vld [vmem:[%s2791_s7 + $0x24] sm:$0x1]  ;;  %v2681_v38 = vld [vmem:[%s3341_s4 + $0x18] sm:$0xff]  }
  0x6a   : > { %v2407_v53 = vcombine.low %v936_v48, %v950_v49  ;;  %v1706_v55 = vor.u32 %v1705_v45, %v1702_v44  ;;  %v955_v56 = vshll.u32 %v863_v36, 16  ;;  %v954_v60 = vrot.slane %v952_v52, 4  ;;  %2598 = vmatpush3.bf16.msra.mxu1 %v2680_v16  ;;  %v2665_v39 = vld [vmem:[%s2797_s10 + $0x18] ss:$8 sps:$4 sm:$0xff]   ;;  %v2521_v44 = vld [vmem:[%s2797_s10 + $0x8] sm:$0xf]  ;;  %2570 = vmatprep.subr.bf16.mxu0 %v2681_v38 }
  0x6b   : > { %838 = vrot.lane.b32.xlu1 %v2661_v14, %s2712_s16  ;;  %v961_v61 = vshll.u32 %v864_v41, 16  ;;  %v966_v62 = vshrl.u32 %v865_v46, 16  ;;  %v969_v63 = vshll.u32 %v865_v46, 16  ;;  %v1693_v0 = vrot.slane %v1692_v54, 4  ;;  %v1019_v14 = vld [vmem:[%s2797_s10 + $0x2c] sm:$0x1]  ;;  %2591 = vmatprep.subr.bf16.mxu1 %v2681_v38 }
  0x6c   : > { %793 = vrot.lane.b32.xlu0 %v2660_v24, %s2711_s15  ;;  %v1707_v1 = vrot.slane %v1706_v55, 4  ;;  %v957_v2 = vrot.slane %v955_v56, 5  ;;  %v975_v3 = vshll.u32 %v866_v51, 16  ;;  %v1081_v9 = vshrl.u32 %v1016_v57, 16  ;;  %v2522_v49 = vld [vmem:[%s2797_s10 + $0xc] sm:$0x1] }
  0x6d   : > { %v963_v5 = vrot.slane %v961_v61, 5  ;;  %v968_v6 = vrot.slane %v966_v62, 4  ;;  %v971_v7 = vrot.slane %v969_v63, 5  ;;  %v1698_v10 = vsel %vm2824_vm2, %v1693_v0, %v1697_v43  ;;  %2571 = vmatpush3.bf16.msra.mxu0 %v2681_v38  ;;  %v2524_v63 = vld [vmem:[%s2797_s10 + $0x14] sm:$0x1]  ;;  %v2682_v0 = vld [vmem:[%s3341_s4 + $0x20] sm:$0xff]  }
  0x6e   : > { %v1712_v11 = vsel %vm2824_vm2, %v1707_v1, %v1711_v50  ;;  %v958_v12 = vor.u32 %v957_v2, %v954_v60  ;;  %v977_v13 = vrot.slane %v975_v3, 5  ;;  %v1083_v20 = vrot.slane %v1081_v9, 4  ;;  %2599 = vmatpush3.bf16.msra.mxu1 %v2681_v38  ;;  %2572 = vmatprep.subr.bf16.mxu0 %v2682_v0  ;;  %v1023_v16 = vld [vmem:[%s2797_s10 + $0x3c] sm:$0x1] }
  0x6f   : > { %1652 = vrot.lane.b32.xlu1 %v2663_v47, %s2723_s13  ;;  %v2517_v18 = vcombine.low %v1698_v10, %v1712_v11  ;;  %v972_v19 = vor.u32 %v971_v7, %v968_v6  ;;  %v1084_v21 = vshll.u32 %v1016_v57, 16  ;;  %v1090_v23 = vshll.u32 %v1017_v4, 16  ;;  %v2523_v57 = vld [vmem:[%s2797_s10 + $0x10] sm:$0xf]  ;;  %v1021_v6 = vld [vmem:[%s2797_s10 + $0x34] sm:$0x1]  ;;  %2592 = vmatprep.subr.bf16.mxu1 %v2682_v0 }
  0x70   : > { %1607 = vrot.lane.b32.xlu0 %v2662_v59, %s2722_s30  ;;  %v959_v22 = vrot.slane %v958_v12, 4  ;;  %v1095_v24 = vshrl.u32 %v1018_v8, 16  ;;  %v1098_v25 = vshll.u32 %v1018_v8, 16  ;;  %v1104_v30 = vshll.u32 %v1019_v14, 16  ;;  %v1022_v11 = vld [vmem:[%s2797_s10 + $0x38] sm:$0xf] }
  0x71   : > { %v973_v27 = vrot.slane %v972_v19, 4  ;;  %v1086_v28 = vrot.slane %v1084_v21, 5  ;;  %v1714_v32 = vshrl.u32 %v2505_v15, 16  ;;  %v1092_v34 = vrot.slane %v1090_v23, 5  ;;  %2573 = vmatpush3.bf16.msra.mxu0 %v2682_v0  ;;  %v2525_v21 = vld [vmem:[%s2797_s10 + $0x18] sm:$0xf] }
  0x72   : > { %v964_v33 = vsel %vm2824_vm2, %v959_v22, %v963_v5  ;;  %v1097_v35 = vrot.slane %v1095_v24, 4  ;;  %v1100_v36 = vrot.slane %v1098_v25, 5  ;;  %v1106_v42 = vrot.slane %v1104_v30, 5  ;;  %v1020_v5 = vld [vmem:[%s2797_s10 + $0x30] sm:$0xf]  ;;  %2600 = vmatpush3.bf16.msra.mxu1 %v2682_v0 }
  0x73   : > { %995 = vrot.lane.b32.xlu1 %v2407_v53, %s2715_s19  ;;  %v978_v40 = vsel %vm2824_vm2, %v973_v27, %v977_v13  ;;  %v1087_v41 = vor.u32 %v1086_v28, %v1083_v20  ;;  %v1716_v43 = vrot.slane %v1714_v32, 4  ;;  %v1717_v47 = vshll.u32 %v2505_v15, 16  ;;  %v2683_v32 = vld [vmem:[%s3341_s4 + $0x28] sm:$0xff]  }
  0x74   : > { %840 = vrot.lane.b32.xlu0 %v2664_v17, %s2712_s16  ;;  %v2408_v45 = vcombine.low %v964_v33, %v978_v40  ;;  %v1101_v46 = vor.u32 %v1100_v36, %v1097_v35  ;;  %v1723_v48 = vshll.u32 %v2506_v26, 16  ;;  %v1728_v51 = vshrl.u32 %v2507_v31, 16  ;;  %2574 = vmatprep.subr.bf16.mxu0 %v2683_v32 }
  0x75   : > { %v1088_v50 = vrot.slane %v1087_v41, 4  ;;  %v1731_v52 = vshll.u32 %v2507_v31, 16  ;;  %v1737_v53 = vshll.u32 %v2508_v37, 16  ;;  %v1719_v55 = vrot.slane %v1717_v47, 5  ;;  %v2526_v31 = vld [vmem:[%s2797_s10 + $0x1c] sm:$0x1]  ;;  %2593 = vmatprep.subr.bf16.mxu1 %v2683_v32  ;;  %2575 = vmatpush3.bf16.msra.mxu0 %v2683_v32 }
  0x76   : > { %v1102_v54 = vrot.slane %v1101_v46, 4  ;;  %v1725_v56 = vrot.slane %v1723_v48, 5  ;;  %v1843_v58 = vshrl.u32 %v2521_v44, 16  ;;  %v1730_v60 = vrot.slane %v1728_v51, 4  ;;  %v2527_v41 = vld [vmem:[%s2797_s10 + $0x20] sm:$0xf]  ;;  %2601 = vmatpush3.bf16.msra.mxu1 %v2683_v32 }
  0x77   : > { %1809 = vrot.lane.b32.xlu1 %v2517_v18, %s2724_s9  ;;  %v1093_v59 = vsel %vm2824_vm2, %v1088_v50, %v1092_v34  ;;  %v1733_v61 = vrot.slane %v1731_v52, 5  ;;  %v1739_v62 = vrot.slane %v1737_v53, 5  ;;  %v1720_v2 = vor.u32 %v1719_v55, %v1716_v43  ;;  %v2445_v55 = vld [vmem:[%s2805_s14 + $0x28] sm:$0xf] }
  0x78   : > { %1654 = vrot.lane.b32.xlu0 %v2665_v39, %s2723_s13  ;;  %v1107_v1 = vsel %vm2824_vm2, %v1102_v54, %v1106_v42  ;;  %v1845_v3 = vrot.slane %v1843_v58, 4  ;;  %v1846_v4 = vshll.u32 %v2521_v44, 16  ;;  %v1852_v9 = vshll.u32 %v2522_v49, 16  ;;  %v2528_v49 = vld [vmem:[%s2797_s10 + $0x24] sm:$0x1] }
  0x79   : > { %v2411_v7 = vcombine.low %v1093_v59, %v1107_v1  ;;  %v1734_v8 = vor.u32 %v1733_v61, %v1730_v60  ;;  %v1857_v10 = vshrl.u32 %v2523_v57, 16  ;;  %v1721_v12 = vrot.slane %v1720_v2, 4  ;;  %v2446_v61 = vld [vmem:[%s2805_s14 + $0x2c] sm:$0x1]  ;;  %v2447_v2 = vld [vmem:[%s2805_s14 + $0x30] sm:$0xf] }
  0x7a   : > { %v1848_v13 = vrot.slane %v1846_v4, 5  ;;  %v1860_v14 = vshll.u32 %v2523_v57, 16  ;;  %v1866_v15 = vshll.u32 %v2524_v63, 16  ;;  %v1854_v18 = vrot.slane %v1852_v9, 5 }
  0x7b   : > { %1152 = vrot.lane.b32.xlu1 %v2411_v7, %s2716_s20  ;;  %v1735_v17 = vrot.slane %v1734_v8, 4  ;;  %v1859_v19 = vrot.slane %v1857_v10, 4  ;;  %v1109_v20 = vshrl.u32 %v1020_v5, 16  ;;  %v1726_v22 = vsel %vm2824_vm2, %v1721_v12, %v1725_v56  ;;  %v2684_v56 = vld [vmem:[%s3341_s4 + $0x30] sm:$0xff]  }
  0x7c   : > { %997 = vrot.lane.b32.xlu0 %v2408_v45, %s2715_s19  ;;  %v1849_v23 = vor.u32 %v1848_v13, %v1845_v3  ;;  %v1862_v24 = vrot.slane %v1860_v14, 5  ;;  %v1868_v25 = vrot.slane %v1866_v15, 5  ;;  %v1112_v28 = vshll.u32 %v1020_v5, 16  ;;  %2576 = vmatprep.subr.bf16.mxu0 %v2684_v56  ;;  %v2666_v5 = vld [vmem:[%s2805_s14 + $0x28] ss:$8 sps:$4 sm:$0xff]  }
  0x7d   : > { %v1740_v26 = vsel %vm2824_vm2, %v1735_v17, %v1739_v62  ;;  %v1111_v27 = vrot.slane %v1109_v20, 4  ;;  %v1118_v30 = vshll.u32 %v1021_v6, 16  ;;  %v1123_v36 = vshrl.u32 %v1022_v11, 16  ;;  %2594 = vmatprep.subr.bf16.mxu1 %v2684_v56  ;;  %2577 = vmatpush3.bf16.msra.mxu0 %v2684_v56  ;;  %v2448_v10 = vld [vmem:[%s2805_s14 + $0x34] sm:$0x1] }
  0x7e   : > { %v2518_v33 = vcombine.low %v1726_v22, %v1740_v26  ;;  %v1850_v34 = vrot.slane %v1849_v23, 4  ;;  %v1863_v35 = vor.u32 %v1862_v24, %v1859_v19  ;;  %v1114_v37 = vrot.slane %v1112_v28, 5  ;;  %2602 = vmatpush3.bf16.msra.mxu1 %v2684_v56  ;;  %v2667_v15 = vld [vmem:[%s2805_s14 + $0x38] ss:$8 sps:$4 sm:$0xff]   ;;  %v2450_v24 = vld [vmem:[%s2805_s14 + $0x3c] sm:$0x1] }
  0x7f   : > { %v1120_v38 = vrot.slane %v1118_v30, 5  ;;  %v1126_v39 = vshll.u32 %v1022_v11, 16  ;;  %v1132_v40 = vshll.u32 %v1023_v16, 16  ;;  %v1125_v44 = vrot.slane %v1123_v36, 4  ;;  %v2685_v19 = vld [vmem:[%s3341_s4 + $0x38] sm:$0xff]  }
  0x80   : > { %1811 = vrot.lane.b32.xlu0 %v2518_v33, %s2724_s9  ;;  %v1855_v42 = vsel %vm2824_vm2, %v1850_v34, %v1854_v18  ;;  %v1864_v43 = vrot.slane %v1863_v35, 4  ;;  %v1871_v45 = vshrl.u32 %v2525_v21, 16  ;;  %v1115_v46 = vor.u32 %v1114_v37, %v1111_v27  ;;  %v2449_v18 = vld [vmem:[%s2805_s14 + $0x38] sm:$0xf]  ;;  %2578 = vmatprep.subr.bf16.mxu0 %v2685_v19  ;;  %v2465_v37 = vld [vmem:[%s2786_s28 + $0x28] sm:$0xf] }
  0x81   : > { %v1128_v47 = vrot.slane %v1126_v39, 5  ;;  %v1134_v48 = vrot.slane %v1132_v40, 5  ;;  %v1874_v50 = vshll.u32 %v2525_v21, 16  ;;  %v1880_v53 = vshll.u32 %v2526_v31, 16  ;;  %v2452_v31 = vld [vmem:[%s2805_s14 + $0x44] sm:$0x1]  ;;  %2579 = vmatpush3.bf16.msra.mxu0 %v2685_v19  ;;  %2595 = vmatprep.subr.bf16.mxu1 %v2685_v19 }
  0x82   : > { %v1869_v51 = vsel %vm2824_vm2, %v1864_v43, %v1868_v25  ;;  %v1873_v52 = vrot.slane %v1871_v45, 4  ;;  %v1885_v54 = vshrl.u32 %v2527_v41, 16  ;;  %v1116_v58 = vrot.slane %v1115_v46, 4  ;;  %v2451_v25 = vld [vmem:[%s2805_s14 + $0x40] sm:$0xf]  ;;  %2603 = vmatpush3.bf16.msra.mxu1 %v2685_v19 }
  0x83   : > { %v2537_v57 = vcombine.low %v1855_v42, %v1869_v51  ;;  %v1129_v59 = vor.u32 %v1128_v47, %v1125_v44  ;;  %v1876_v60 = vrot.slane %v1874_v50, 5  ;;  %v3077_v62 = vrot.slane %v1880_v53, 5  ;;  %v2466_v43 = vld [vmem:[%s2786_s28 + $0x2c] sm:$0x1]  ;;  %v2668_v50 = vld [vmem:[%s2786_s28 + $0x28] ss:$8 sps:$4 sm:$0xff]  }
  0x84   : > { %v1887_v63 = vrot.slane %v1885_v54, 4  ;;  %v1888_v0 = vshll.u32 %v2527_v41, 16  ;;  %v1894_v1 = vshll.u32 %v2528_v49, 16  ;;  %v1121_v3 = vsel %vm2824_vm2, %v1116_v58, %v1120_v38  ;;  %v2669_v38 = vld [vmem:[%s2786_s28 + $0x38] ss:$8 sps:$4 sm:$0xff]  }
  0x85   : > { %1966 = vrot.lane.b32.xlu1 %v2537_v57, %s2725_s18  ;;  %v1130_v4 = vrot.slane %v1129_v59, 4  ;;  %v1877_v6 = vor.u32 %v1876_v60, %v1873_v52  ;;  %v1334_v7 = vshrl.u32 %v2445_v55, 16  ;;  %v1337_v11 = vshll.u32 %v2445_v55, 16  ;;  %v3099_v32 = vpop.permute.xlu0 %423  ;;  %v2468_v58 = vld [vmem:[%s2786_s28 + $0x34] sm:$0x1]  ;;  %v3114_v60 = vpop.permute.xlu1 %789 }
  0x86   : > { %v1890_v8 = vrot.slane %v1888_v0, 5  ;;  %v1896_v9 = vrot.slane %v1894_v1, 5  ;;  %v1343_v12 = vshll.u32 %v2446_v61, 16  ;;  %v1348_v17 = vshrl.u32 %v2447_v2, 16  ;;  %v2469_v59 = vld [vmem:[%s2786_s28 + $0x38] sm:$0xf] }
  0x87   : > { %v1135_v13 = vsel %vm2824_vm2, %v1130_v4, %v1134_v48  ;;  %v1878_v14 = vrot.slane %v1877_v6, 4  ;;  %v1336_v16 = vrot.slane %v1334_v7, 4  ;;  %v1339_v22 = vrot.slane %v1337_v11, 5  ;;  %v2467_v48 = vld [vmem:[%s2786_s28 + $0x30] sm:$0xf] }
  0x88   : > { %v2412_v20 = vcombine.low %v1121_v3, %v1135_v13  ;;  %v1891_v21 = vor.u32 %v1890_v8, %v1887_v63  ;;  %v1345_v23 = vrot.slane %v1343_v12, 5  ;;  %v1350_v27 = vrot.slane %v1348_v17, 4  ;;  %v2470_v1 = vld [vmem:[%s2786_s28 + $0x3c] sm:$0x1]  ;;  %v2471_v7 = vld [vmem:[%s2786_s28 + $0x40] sm:$0xf] }
  0x89   : > { %1201 = vrot.lane.b32.xlu1 %v2666_v5, %s2717_s25  ;;  %v1883_v26 = vsel %vm2824_vm2, %v1878_v14, %v3077_v62  ;;  %v1351_v28 = vshll.u32 %v2447_v2, 16  ;;  %v1357_v30 = vshll.u32 %v2448_v10, 16  ;;  %v1340_v34 = vor.u32 %v1339_v22, %v1336_v16  ;;  %v3118_v2 = vpop.permute.xlu0 %425 }
  0x8a   : > { %1154 = vrot.lane.b32.xlu0 %v2412_v20, %s2716_s20  ;;  %v1892_v33 = vrot.slane %v1891_v21, 4  ;;  %v1362_v35 = vshrl.u32 %v2449_v18, 16  ;;  %v1365_v36 = vshll.u32 %v2449_v18, 16  ;;  %v1371_v41 = vshll.u32 %v2450_v24, 16  ;;  %v3127_v24 = vpop.permute.xlu1 %836  ;;  %s2551_s20 = sshll.u32 %s3351_s21, 5 }
  0x8b   : > { %v1353_v39 = vrot.slane %v1351_v28, 5  ;;  %v1359_v40 = vrot.slane %v1357_v30, 5  ;;  %v1376_v42 = vshrl.u32 %v2451_v25, 16  ;;  %v1341_v45 = vrot.slane %v1340_v34, 4  ;;  %v2472_v28 = vld [vmem:[%s2786_s28 + $0x44] sm:$0x1] }
  0x8c   : > { %v1897_v44 = vsel %vm2824_vm2, %v1892_v33, %v1896_v9  ;;  %v1364_v46 = vrot.slane %v1362_v35, 4  ;;  %v1367_v47 = vrot.slane %v1365_v36, 5  ;;  %v1373_v52 = vrot.slane %v1371_v41, 5  ;;  %s2380_s28 = sshll.u32 %s3351_s21, 3 }
  0x8d   : > { %v2538_v49 = vcombine.low %v1883_v26, %v1897_v44  ;;  %1203 = vrot.lane.b32.xlu1 %v2667_v15, %s2717_s25  ;;  %v1354_v51 = vor.u32 %v1353_v39, %v1350_v27  ;;  %v1378_v53 = vrot.slane %v1376_v42, 4  ;;  %v1346_v54 = vsel %vm2824_vm2, %v1341_v45, %v1345_v23  ;;  %v2510_v42 = vld [vmem:[%s2791_s7 + $0x2c] sm:$0x1] }
  0x8e   : > { %v1368_v55 = vor.u32 %v1367_v47, %v1364_v46  ;;  %v1379_v56 = vshll.u32 %v2451_v25, 16  ;;  %v1385_v57 = vshll.u32 %v2452_v31, 16  ;;  %v1491_v62 = vshrl.u32 %v2465_v37, 16  ;;  %v3130_v31 = vpop.permute.xlu0 %787 }
  0x8f   : > { %1968 = vrot.lane.b32.xlu0 %v2538_v49, %s2725_s18  ;;  %v1355_v61 = vrot.slane %v1354_v51, 4  ;;  %v1494_v63 = vshll.u32 %v2465_v37, 16  ;;  %v1500_v0 = vshll.u32 %v2466_v43, 16  ;;  %v1505_v6 = vshrl.u32 %v2467_v48, 16  ;;  %v2509_v37 = vld [vmem:[%s2791_s7 + $0x28] sm:$0xf] }
  0x90   : > { %v1369_v3 = vrot.slane %v1368_v55, 4  ;;  %v1381_v4 = vrot.slane %v1379_v56, 5  ;;  %v1387_v5 = vrot.slane %v1385_v57, 5  ;;  %v1493_v9 = vrot.slane %v1491_v62, 4  ;;  %v2511_v43 = vld [vmem:[%s2791_s7 + $0x30] sm:$0xf] }
  0x91   : > { %1250 = vrot.lane.b32.xlu1 %v2669_v38, %s2718_s26  ;;  %v1360_v8 = vsel %vm2824_vm2, %v1355_v61, %v1359_v40  ;;  %v1496_v10 = vrot.slane %v1494_v63, 5  ;;  %v1502_v11 = vrot.slane %v1500_v0, 5  ;;  %v1507_v15 = vrot.slane %v1505_v6, 4  ;;  %v2513_v57 = vld [vmem:[%s2791_s7 + $0x38] sm:$0xf] }
  0x92   : > { %v2455_v12 = vcombine.low %v1346_v54, %v1360_v8  ;;  %v1374_v13 = vsel %vm2824_vm2, %v1369_v3, %v1373_v52  ;;  %v1382_v14 = vor.u32 %v1381_v4, %v1378_v53  ;;  %v1508_v17 = vshll.u32 %v2467_v48, 16  ;;  %v2514_v0 = vld [vmem:[%s2791_s7 + $0x3c] sm:$0x1]  ;;  %v3149_v3 = vpop.permute.xlu0 %834  ;;  %v2670_v6 = vld [vmem:[%s2791_s7 + $0x28] ss:$8 sps:$4 sm:$0xff]  }
  0x93   : > { %1248 = vrot.lane.b32.xlu0 %v2668_v50, %s2718_s26  ;;  %v1497_v16 = vor.u32 %v1496_v10, %v1493_v9  ;;  %v1514_v18 = vshll.u32 %v2468_v58, 16  ;;  %v1519_v19 = vshrl.u32 %v2469_v59, 16  ;;  %v1522_v21 = vshll.u32 %v2469_v59, 16  ;;  %v2512_v50 = vld [vmem:[%s2791_s7 + $0x34] sm:$0x1]  ;;  %v3143_v58 = vpop.permute.xlu1 %583 }
  0x94   : > { %v1383_v20 = vrot.slane %v1382_v14, 4  ;;  %v1528_v22 = vshll.u32 %v2470_v1, 16  ;;  %v1533_v23 = vshrl.u32 %v2471_v7, 16  ;;  %v1510_v26 = vrot.slane %v1508_v17, 5  ;;  %v2515_v1 = vld [vmem:[%s2791_s7 + $0x40] sm:$0xf] }
  0x95   : > { %v1498_v25 = vrot.slane %v1497_v16, 4  ;;  %v1516_v27 = vrot.slane %v1514_v18, 5  ;;  %v1521_v30 = vrot.slane %v1519_v19, 4  ;;  %v1524_v34 = vrot.slane %v1522_v21, 5  ;;  %v2516_v9 = vld [vmem:[%s2791_s7 + $0x44] sm:$0x1] }
  0x96   : > { %v1388_v33 = vsel %vm2824_vm2, %v1383_v20, %v1387_v5  ;;  %v1530_v35 = vrot.slane %v1528_v22, 5  ;;  %v1535_v36 = vrot.slane %v1533_v23, 4  ;;  %v1511_v40 = vor.u32 %v1510_v26, %v1507_v15  ;;  %v2674_v14 = vld [vmem:[%s2805_s14] ss:$8 sps:$4 sm:$0xff]  }
  0x97   : > { %1405 = vrot.lane.b32.xlu0 %v2455_v12, %s2719_s27  ;;  %v2456_v38 = vcombine.low %v1374_v13, %v1388_v33  ;;  %v1503_v39 = vsel %vm2824_vm2, %v1498_v25, %v1502_v11  ;;  %v1536_v41 = vshll.u32 %v2471_v7, 16  ;;  %v1525_v44 = vor.u32 %v1524_v34, %v1521_v30  ;;  %v2529_v19 = vld [vmem:[%s2797_s10 + $0x28] sm:$0xf]  ;;  %389 = vst.msk [vmem:[#allocation2] sm:$0xff] %vm388_vm4, %v2674_v14  ;;  %v2530_v25 = vld [vmem:[%s2797_s10 + $0x2c] sm:$0x1] }
  0x98   : > { %v1542_v45 = vshll.u32 %v2472_v28, 16  ;;  %v1742_v46 = vshrl.u32 %v2509_v37, 16  ;;  %v1745_v47 = vshll.u32 %v2509_v37, 16  ;;  %v1512_v48 = vrot.slane %v1511_v40, 4  ;;  %v2672_v28 = vld [vmem:[%s2797_s10 + $0x28] ss:$8 sps:$4 sm:$0xff]  }
  0x99   : > { %1407 = vrot.lane.b32.xlu1 %v2456_v38, %s2719_s27  ;;  %v1538_v49 = vrot.slane %v1536_v41, 5  ;;  %v1751_v51 = vshll.u32 %v2510_v42, 16  ;;  %v1756_v52 = vshrl.u32 %v2511_v43, 16  ;;  %v1526_v53 = vrot.slane %v1525_v44, 4  ;;  %436 = vst.msk [vmem:[#allocation2] sm:$0xff] %vm435_vm5, %v3099_v32  ;;  %s3290_s27 = scalar_lea.vmem %s3342_s5, %s2551_s20 }
  0x9a   : > { %v1544_v54 = vrot.slane %v1542_v45, 5  ;;  %v1744_v55 = vrot.slane %v1742_v46, 4  ;;  %v1747_v56 = vrot.slane %v1745_v47, 5  ;;  %v1517_v59 = vsel %vm2824_vm2, %v1512_v48, %v1516_v27  ;;  %v2671_v27 = vld [vmem:[%s2791_s7 + $0x38] ss:$8 sps:$4 sm:$0xff]   ;;  %596 = vst.msk [vmem:[#allocation2] sm:$0xff] %vm595_vm6, %v3143_v58 }
  0x9b   : > { %v1539_v61 = vor.u32 %v1538_v49, %v1535_v36  ;;  %v1753_v62 = vrot.slane %v1751_v51, 5  ;;  %v1758_v63 = vrot.slane %v1756_v52, 4  ;;  %v2475_v4 = vcombine.low %v1503_v39, %v1517_v59  ;;  %v3169_v36 = vpop.permute.xlu1 %585  ;;  %v2532_v41 = vld [vmem:[%s2797_s10 + $0x34] sm:$0x1]  ;;  %v2533_v46 = vld [vmem:[%s2797_s10 + $0x38] sm:$0xf] }
  0x9c   : > { %v1531_v5 = vsel %vm2824_vm2, %v1526_v53, %v1530_v35  ;;  %v1748_v7 = vor.u32 %v1747_v56, %v1744_v55  ;;  %v1759_v8 = vshll.u32 %v2511_v43, 16  ;;  %v1765_v11 = vshll.u32 %v2512_v50, 16  ;;  %v2531_v35 = vld [vmem:[%s2797_s10 + $0x30] sm:$0xf]  ;;  %v2534_v51 = vld [vmem:[%s2797_s10 + $0x3c] sm:$0x1] }
  0x9d   : > { %v1540_v10 = vrot.slane %v1539_v61, 4  ;;  %v1770_v12 = vshrl.u32 %v2513_v57, 16  ;;  %v1773_v13 = vshll.u32 %v2513_v57, 16  ;;  %1562 = vrot.lane.b32.xlu0 %v2475_v4, %s2720_s29  ;;  %v1779_v17 = vshll.u32 %v2514_v0, 16  ;;  %v3172_v42 = vpop.permute.xlu0 %740  ;;  %v2673_v52 = vld [vmem:[%s2797_s10 + $0x38] ss:$8 sps:$4 sm:$0xff]  }
  0x9e   : > { %v1749_v15 = vrot.slane %v1748_v7, 4  ;;  %v1761_v16 = vrot.slane %v1759_v8, 5  ;;  %v1784_v18 = vshrl.u32 %v2515_v1, 16  ;;  %v1767_v21 = vrot.slane %v1765_v11, 5  ;;  %v2535_v57 = vld [vmem:[%s2797_s10 + $0x40] sm:$0xf] }
  0x9f   : > { %v1545_v20 = vsel %vm2824_vm2, %v1540_v10, %v1544_v54  ;;  %v1772_v22 = vrot.slane %v1770_v12, 4  ;;  %v1775_v23 = vrot.slane %v1773_v13, 5  ;;  %v1781_v34 = vrot.slane %v1779_v17, 5  ;;  %v2675_v7 = vld [vmem:[%s2805_s14 + $0x10] ss:$8 sps:$4 sm:$0xff]   ;;  %753 = vst.msk [vmem:[#allocation2] sm:$0xff] %vm752_vm7, %v3172_v42 }
  0xa0   : > { %v2476_v26 = vcombine.low %v1531_v5, %v1545_v20  ;;  %v1754_v30 = vsel %vm2824_vm2, %v1749_v15, %v1753_v62  ;;  %v1762_v33 = vor.u32 %v1761_v16, %v1758_v63  ;;  %v1786_v38 = vrot.slane %v1784_v18, 4  ;;  %v2536_v5 = vld [vmem:[%s2797_s10 + $0x44] sm:$0x1]  ;;  %390 = vst.msk [vmem:[#allocation2 + $0x8] sm:$0xff] %vm388_vm4, %v2675_v7 }
  0xa1   : > { %v1776_v37 = vor.u32 %v1775_v23, %v1772_v22  ;;  %v1787_v39 = vshll.u32 %v2515_v1, 16  ;;  %v1793_v40 = vshll.u32 %v2516_v9, 16  ;;  %1609 = vrot.lane.b32.xlu0 %v2670_v6, %s2722_s30  ;;  %v1899_v44 = vshrl.u32 %v2529_v19, 16  ;;  %v743_v8 = vpop.permute.xlu1 %742  ;;  %437 = vst.msk [vmem:[#allocation2 + $0x8] sm:$0xff] %vm435_vm5, %v3118_v2  ;;  %v2676_v22 = vld [vmem:[%s2805_s14 + $0x20] ss:$8 sps:$4 sm:$0xff]  }
  0xa2   : > { %1564 = vrot.lane.b32.xlu1 %v2476_v26, %s2720_s29  ;;  %v1763_v43 = vrot.slane %v1762_v33, 4  ;;  %v1902_v32 = vshll.u32 %v2529_v19, 16  ;;  %v1908_v45 = vshll.u32 %v2530_v25, 16  ;;  %v1913_v50 = vshrl.u32 %v2531_v35, 16  ;;  %391 = vst.msk [vmem:[#allocation2 + $0x10] sm:$0xff] %vm388_vm4, %v2676_v22 }
  0xa3   : > { %v1777_v47 = vrot.slane %v1776_v37, 4  ;;  %v1789_v48 = vrot.slane %v1787_v39, 5  ;;  %v1795_v49 = vrot.slane %v1793_v40, 5  ;;  %v1901_v54 = vrot.slane %v1899_v44, 4  ;;  %v2677_v33 = vld [vmem:[%s2805_s14 + $0x30] ss:$8 sps:$4 sm:$0xff]   ;;  %s3282_s14 = scalar_lea.vmem %s3343_s6, %s2380_s28 }
  0xa4   : > { %v1768_v53 = vsel %vm2824_vm2, %v1763_v43, %v1767_v21  ;;  %v1904_v55 = vrot.slane %v1902_v32, 5  ;;  %v3181_v56 = vrot.slane %v1908_v45, 5  ;;  %v1915_v63 = vrot.slane %v1913_v50, 4  ;;  %597 = vst.msk [vmem:[#allocation2 + $0x8] sm:$0xff] %vm595_vm6, %v3169_v36 }
  0xa5   : > { %v2519_v59 = vcombine.low %v1754_v30, %v1768_v53  ;;  %v1782_v61 = vsel %vm2824_vm2, %v1777_v47, %v1781_v34  ;;  %v1790_v62 = vor.u32 %v1789_v48, %v1786_v38  ;;  %1656 = vrot.lane.b32.xlu0 %v2672_v28, %s2723_s13  ;;  %v1916_v1 = vshll.u32 %v2531_v35, 16  ;;  %754 = vst.msk [vmem:[#allocation2 + $0x8] sm:$0xff] %vm752_vm7, %v743_v8 }
  0xa6   : > { %1611 = vrot.lane.b32.xlu1 %v2671_v27, %s2722_s30  ;;  %v1905_v0 = vor.u32 %v1904_v55, %v1901_v54  ;;  %v1922_v4 = vshll.u32 %v2532_v41, 16  ;;  %v1927_v6 = vshrl.u32 %v2533_v46, 16  ;;  %v1930_v10 = vshll.u32 %v2533_v46, 16  ;;  %v992_v13 = vpop.permute.xlu0 %991  ;;  %392 = vst.msk [vmem:[#allocation2 + $0x18] sm:$0xff] %vm388_vm4, %v2677_v33 }
  0xa7   : > { %v1791_v9 = vrot.slane %v1790_v62, 4  ;;  %v1936_v11 = vshll.u32 %v2534_v51, 16  ;;  %v1941_v12 = vshrl.u32 %v2535_v57, 16  ;;  %v1918_v15 = vrot.slane %v1916_v1, 5  ;;  %800 = vst.msk [vmem:[#allocation2] sm:$0xff] %vm799_vm8, %v3130_v31  ;;  %801 = vst.msk [vmem:[#allocation2 + $0x8] sm:$0xff] %vm799_vm8, %v3114_v60 }
  0xa8   : > { %v1906_v14 = vrot.slane %v1905_v0, 4  ;;  %v1924_v16 = vrot.slane %v1922_v4, 5  ;;  %v1929_v17 = vrot.slane %v1927_v6, 4  ;;  %v1932_v19 = vrot.slane %v1930_v10, 5  ;;  %847 = vst.msk [vmem:[#allocation2] sm:$0xff] %vm846_vm9, %v3149_v3  ;;  %848 = vst.msk [vmem:[#allocation2 + $0x8] sm:$0xff] %vm846_vm9, %v3127_v24 }
  0xa9   : > { %v1796_v18 = vsel %vm2824_vm2, %v1791_v9, %v1795_v49  ;;  %v1938_v20 = vrot.slane %v1936_v11, 5  ;;  %v1943_v21 = vrot.slane %v1941_v12, 4  ;;  %1813 = vrot.lane.b32.xlu0 %v2519_v59, %s2724_s9  ;;  %v1919_v26 = vor.u32 %v1918_v15, %v1915_v63  ;;  %1004 = vst.msk [vmem:[#allocation2] sm:$0xff] %vm1003_vm10, %v992_v13 }
  0xaa   : > { %1658 = vrot.lane.b32.xlu1 %v2673_v52, %s2723_s13  ;;  %v2520_v23 = vcombine.low %v1782_v61, %v1796_v18  ;;  %v1911_v25 = vsel %vm2824_vm2, %v1906_v14, %v3181_v56  ;;  %v1944_v27 = vshll.u32 %v2535_v57, 16  ;;  %v1933_v28 = vor.u32 %v1932_v19, %v1929_v17 }
  0xab   : > { %v1950_v30 = vshll.u32 %v2536_v5, 16  ;;  %v1920_v2 = vrot.slane %v1919_v26, 4  ;;  %v994_v35 = vpop.permute.xlu1 %993  ;;  %vm1978_vm3 = vcmask 523744   ;;  %vm2120_vm4 = vcmask 64512  }
  0xac   : > { %v1946_v34 = vrot.slane %v1944_v27, 5  ;;  %v1934_v37 = vrot.slane %v1933_v28, 4  ;;  %1005 = vst.msk [vmem:[#allocation2 + $0x8] sm:$0xff] %vm1003_vm10, %v994_v35 }
  0xad   : > { %v1925_v58 = vsel %vm2824_vm2, %v1920_v2, %v1924_v16  ;;  %v1952_v36 = vrot.slane %v1950_v30, 5  ;;  %v2726_v2 = vmov 0.0  }
  0xae   : > { %1815 = vrot.lane.b32.xlu1 %v2520_v23, %s2724_s9  ;;  %v1947_v39 = vor.u32 %v1946_v34, %v1943_v21  ;;  %v2539_v40 = vcombine.low %v1911_v25, %v1925_v58  ;;  %v1939_v41 = vsel %vm2824_vm2, %v1934_v37, %v1938_v20  ;;  %2121 = vst.msk [vmem:[%s3282_s14] sm:$0xff] %vm2120_vm4, %v2726_v2 }
  0xb0   : > { %v1149_v38 = vpop.permute.xlu0 %1148  ;;  %v1948_v42 = vrot.slane %v1947_v39, 4  ;;  %1970 = vrot.lane.b32.xlu0 %v2539_v40, %s2725_s18 }
  0xb1   : > { %1161 = vst.msk [vmem:[#allocation2] sm:$0xff] %vm1160_vm11, %v1149_v38 }
  0xb2   : > { %v1953_v31 = vsel %vm2824_vm2, %v1948_v42, %v1952_v36  ;;  %vm1821_vm2 = vcmask 490944  }
  0xb3   : > { %v2540_v24 = vcombine.low %v1939_v41, %v1953_v31 }
  0xb4   : > { %v1198_v60 = vpop.permute.xlu0 %1197 }
  0xb5   : > { %v1151_v3 = vpop.permute.xlu1 %1150  ;;  %1210 = vst.msk [vmem:[#allocation2] sm:$0xff] %vm1209_vm12, %v1198_v60  ;;  %1972 = vrot.lane.b32.xlu1 %v2540_v24, %s2725_s18  ;;  %v2122_v2 = vld [vmem:[%s3282_s14] sm:$0x1] }
  0xb6   : > { %1162 = vst.msk [vmem:[#allocation2 + $0x8] sm:$0xff] %vm1160_vm11, %v1151_v3 }
  0xb8   : > { %v1200_v43 = vpop.permute.xlu0 %1199 }
  0xb9   : > { %v428_v44 = vpop.permute.xlu1 %427  ;;  %1211 = vst.msk [vmem:[#allocation2 + $0x8] sm:$0xff] %vm1209_vm12, %v1200_v43 }
  0xba   : > { %438 = vst.msk [vmem:[#allocation2 + $0x10] sm:$0xff] %vm435_vm5, %v428_v44 }
  0xbc   : > { %v430_v32 = vpop.permute.xlu0 %429 }
  0xbd   : > { %v1245_v45 = vpop.permute.xlu1 %1244  ;;  %439 = vst.msk [vmem:[#allocation2 + $0x18] sm:$0xff] %vm435_vm5, %v430_v32  ;;  %vm2188_vm5 = vcmask 60416  }
  0xbe   : > { %1257 = vst.msk [vmem:[#allocation2] sm:$0xff] %vm1256_vm13, %v1245_v45 }
  0xc0   : > { %v1247_v29 = vpop.permute.xlu0 %1246 }
  0xc1   : > { %v588_v46 = vpop.permute.xlu1 %587  ;;  %1258 = vst.msk [vmem:[#allocation2 + $0x8] sm:$0xff] %vm1256_vm13, %v1247_v29 }
  0xc2   : > { %598 = vst.msk [vmem:[#allocation2 + $0x10] sm:$0xff] %vm595_vm6, %v588_v46 }
  0xc4   : > { %v590_v47 = vpop.permute.xlu0 %589 }
  0xc5   : > { %v1402_v48 = vpop.permute.xlu1 %1401  ;;  %599 = vst.msk [vmem:[#allocation2 + $0x18] sm:$0xff] %vm595_vm6, %v590_v47  ;;  %vm2146_vm6 = vcmask 57344  }
  0xc6   : > { %1414 = vst.msk [vmem:[#allocation2] sm:$0xff] %vm1413_vm14, %v1402_v48 }
  0xc9   : > { %v745_v49 = vpop.permute.xlu1 %744 }
  0xca   : > { %755 = vst.msk [vmem:[#allocation2 + $0x10] sm:$0xff] %vm752_vm7, %v745_v49 }
  0xcd   : > { %v1404_v50 = vpop.permute.xlu0 %1403 }
  0xce   : > { %1415 = vst.msk [vmem:[#allocation2 + $0x8] sm:$0xff] %vm1413_vm14, %v1404_v50 }
  0xd1   : > { %v1559_v51 = vpop.permute.xlu1 %1558 }
  0xd2   : > { %1571 = vst.msk [vmem:[#allocation2] sm:$0xff] %vm1570_vm15, %v1559_v51 }
  0xd5   : > { %v792_v52 = vpop.permute.xlu1 %791 }
  0xd6   : > { %v747_v53 = vpop.permute.xlu0 %746  ;;  %802 = vst.msk [vmem:[#allocation2 + $0x10] sm:$0xff] %vm799_vm8, %v792_v52 }
  0xd7   : > { %756 = vst.msk [vmem:[#allocation2 + $0x18] sm:$0xff] %vm752_vm7, %v747_v53 }
  0xd9   : > { %v1606_v54 = vpop.permute.xlu1 %1605 }
  0xda   : > { %1618 = vst.msk [vmem:[#allocation2] sm:$0xff] %vm1617_vm0, %v1606_v54  ;;  %v1561_v55 = vpop.permute.xlu0 %1560 }
  0xdb   : > { %1572 = vst.msk [vmem:[#allocation2 + $0x8] sm:$0xff] %vm1570_vm15, %v1561_v55 }
  0xdd   : > { %v839_v56 = vpop.permute.xlu1 %838 }
  0xde   : > { %849 = vst.msk [vmem:[#allocation2 + $0x10] sm:$0xff] %vm846_vm9, %v839_v56  ;;  %v794_v57 = vpop.permute.xlu0 %793 }
  0xdf   : > { %803 = vst.msk [vmem:[#allocation2 + $0x18] sm:$0xff] %vm799_vm8, %v794_v57 }
  0xe1   : > { %v1653_v59 = vpop.permute.xlu1 %1652 }
  0xe2   : > { %1665 = vst.msk [vmem:[#allocation2] sm:$0xff] %vm1664_vm1, %v1653_v59  ;;  %v1608_v61 = vpop.permute.xlu0 %1607 }
  0xe3   : > { %1619 = vst.msk [vmem:[#allocation2 + $0x8] sm:$0xff] %vm1617_vm0, %v1608_v61 }
  0xe5   : > { %v996_v62 = vpop.permute.xlu1 %995 }
  0xe6   : > { %1006 = vst.msk [vmem:[#allocation2 + $0x10] sm:$0xff] %vm1003_vm10, %v996_v62  ;;  %v841_v63 = vpop.permute.xlu0 %840 }
  0xe7   : > { %850 = vst.msk [vmem:[#allocation2 + $0x18] sm:$0xff] %vm846_vm9, %v841_v63 }
  0xe9   : > { %v1810_v0 = vpop.permute.xlu1 %1809 }
  0xea   : > { %1822 = vst.msk [vmem:[#allocation2] sm:$0xff] %vm1821_vm2, %v1810_v0  ;;  %v1655_v1 = vpop.permute.xlu0 %1654 }
  0xeb   : > { %1666 = vst.msk [vmem:[#allocation2 + $0x8] sm:$0xff] %vm1664_vm1, %v1655_v1 }
  0xed   : > { %v1153_v5 = vpop.permute.xlu1 %1152 }
  0xee   : > { %v998_v4 = vpop.permute.xlu0 %997  ;;  %1163 = vst.msk [vmem:[#allocation2 + $0x10] sm:$0xff] %vm1160_vm11, %v1153_v5 }
  0xef   : > { %1007 = vst.msk [vmem:[#allocation2 + $0x18] sm:$0xff] %vm1003_vm10, %v998_v4 }
  0xf2   : > { %v1812_v6 = vpop.permute.xlu0 %1811 }
  0xf3   : > { %1823 = vst.msk [vmem:[#allocation2 + $0x8] sm:$0xff] %vm1821_vm2, %v1812_v6 }
  0xf7   : > { %v1967_v7 = vpop.permute.xlu1 %1966 }
  0xf8   : > { %1979 = vst.msk [vmem:[#allocation2] sm:$0xff] %vm1978_vm3, %v1967_v7 }
  0xfb   : > { %v1202_v8 = vpop.permute.xlu1 %1201 }
  0xfc   : > { %v1155_v9 = vpop.permute.xlu0 %1154  ;;  %1212 = vst.msk [vmem:[#allocation2 + $0x10] sm:$0xff] %vm1209_vm12, %v1202_v8 }
  0xfd   : > { %1164 = vst.msk [vmem:[#allocation2 + $0x18] sm:$0xff] %vm1160_vm11, %v1155_v9 }
  0xff   : > { %v1204_v10 = vpop.permute.xlu1 %1203  ;;  %v1983_v11 = vld [vmem:[#allocation2] sm:$0xff] }
 0x100   : > { %1213 = vst.msk [vmem:[#allocation2 + $0x18] sm:$0xff] %vm1209_vm12, %v1204_v10  ;;  %2580 = vmatprep.mubr.bf16.mxu0 %v1983_v11 }
 0x101   : > { %v1969_v12 = vpop.permute.xlu0 %1968 }
 0x102   : > { %1980 = vst.msk [vmem:[#allocation2 + $0x8] sm:$0xff] %vm1978_vm3, %v1969_v12 }
 0x103   : > { %v1251_v13 = vpop.permute.xlu1 %1250 }
 0x104   : > { %1260 = vst.msk [vmem:[#allocation2 + $0x18] sm:$0xff] %vm1256_vm13, %v1251_v13 }
 0x105   : > { %v1249_v14 = vpop.permute.xlu0 %1248 }
 0x106   : > { %1259 = vst.msk [vmem:[#allocation2 + $0x10] sm:$0xff] %vm1256_vm13, %v1249_v14 }
 0x109   : > { %v1406_v15 = vpop.permute.xlu0 %1405  ;;  %v1984_v16 = vld [vmem:[#allocation2 + $0x8] sm:$0xff] }
 0x10a   : > { %1416 = vst.msk [vmem:[#allocation2 + $0x10] sm:$0xff] %vm1413_vm14, %v1406_v15  ;;  %2581 = vmatmul.mubr.bf16.vlgmr.msra.gmra.mrb[0].mxu0 %v1984_v16 }
 0x10b   : > { %v1408_v17 = vpop.permute.xlu1 %1407 }
 0x10c   : > { %1417 = vst.msk [vmem:[#allocation2 + $0x18] sm:$0xff] %vm1413_vm14, %v1408_v17 }
 0x10f   : > { %v1563_v18 = vpop.permute.xlu0 %1562 }
 0x110   : > { %1573 = vst.msk [vmem:[#allocation2 + $0x10] sm:$0xff] %vm1570_vm15, %v1563_v18 }
 0x113   : > { %v1610_v20 = vpop.permute.xlu0 %1609 }
 0x114   : > { %v1565_v19 = vpop.permute.xlu1 %1564  ;;  %1620 = vst.msk [vmem:[#allocation2 + $0x10] sm:$0xff] %vm1617_vm0, %v1610_v20 }
 0x115   : > { %1574 = vst.msk [vmem:[#allocation2 + $0x18] sm:$0xff] %vm1570_vm15, %v1565_v19 }
 0x117   : > { %v1657_v22 = vpop.permute.xlu0 %1656 }
 0x118   : > { %v1612_v21 = vpop.permute.xlu1 %1611  ;;  %1667 = vst.msk [vmem:[#allocation2 + $0x10] sm:$0xff] %vm1664_vm1, %v1657_v22 }
 0x119   : > { %1621 = vst.msk [vmem:[#allocation2 + $0x18] sm:$0xff] %vm1617_vm0, %v1612_v21 }
 0x11b   : > { %v1814_v25 = vpop.permute.xlu0 %1813 }
 0x11c   : > { %v1659_v23 = vpop.permute.xlu1 %1658  ;;  %1824 = vst.msk [vmem:[#allocation2 + $0x10] sm:$0xff] %vm1821_vm2, %v1814_v25 }
 0x11d   : > { %1668 = vst.msk [vmem:[#allocation2 + $0x18] sm:$0xff] %vm1664_vm1, %v1659_v23 }
 0x120   : > { %v1816_v26 = vpop.permute.xlu1 %1815 }
 0x121   : > { %1825 = vst.msk [vmem:[#allocation2 + $0x18] sm:$0xff] %vm1821_vm2, %v1816_v26 }
 0x122   : > { %v1971_v27 = vpop.permute.xlu0 %1970 }
 0x123   : > { %1981 = vst.msk [vmem:[#allocation2 + $0x10] sm:$0xff] %vm1978_vm3, %v1971_v27 }
 0x127   : > { %v1973_v28 = vpop.permute.xlu1 %1972 }
 0x128   : > { %1982 = vst.msk [vmem:[#allocation2 + $0x18] sm:$0xff] %vm1978_vm3, %v1973_v28 }
 0x12a   : > { %v1985_v30 = vld [vmem:[#allocation2 + $0x10] sm:$0xff] }
 0x12b   : > { %2584 = vmatprep.mubr.bf16.mxu1 %v1985_v30 }
 0x12f   : > { %v1986_v33 = vld [vmem:[#allocation2 + $0x18] sm:$0xff] }
 0x130   : > { %2585 = vmatmul.mubr.bf16.vlgmr.msra.gmra.mrb[0].mxu1 %v1986_v33 }
 0x1dd   : > { %v2582_v34 = vpop.f32.mrb[0].mxu0 }
 0x1de   : > { %v2182_v35 = vpack.c.bf16 %v2582_v34, %v2582_v34  ;;  %v2085_v37 = vpop.f32.mrb[1].mxu0  ;;  %v2151_v36 = vmul.f32 %v2582_v34, %v2582_v34  ;;  %v2127_v43 = vsel %vm2120_vm4, %v2582_v34, 0.0 }
 0x1df   : > { %v2149_v38 = vmul.f32 %v2085_v37, %v2085_v37  ;;  %v2180_v58 = vpack.c.bf16 %v2085_v37, %v2085_v37  ;;  %v2583_v39 = vpop.f32.mrb[2].mxu0  ;;  %v2124_v42 = vsel %vm2120_vm4, %v2085_v37, 0.0  ;;  %v2148_v37 = vld [vmem:[%s3282_s14 + $0x1] sm:$0x1] }
 0x1e0   : > { %2191 = vst.msk [vmem:[%s3290_s27 + $0x8] sm:$0xf] %vm2188_vm5, %v2182_v35  ;;  %v2183_v40 = vpack.c.bf16 %v2583_v39, %v2583_v39  ;;  %v2088_v41 = vpop.f32.mrb[3].mxu0  ;;  %v2152_v32 = vmul.f32 %v2583_v39, %v2583_v39  ;;  %v2160_v47 = vsel %vm2120_vm4, %v2151_v36, 0.0  ;;  %v2129_v48 = vsel %vm2120_vm4, %v2583_v39, 0.0 }
 0x1e1   : > { %2189 = vst.msk [vmem:[%s3290_s27] sm:$0xf] %vm2188_vm5, %v2180_v58  ;;  %v2125_v60 = vsel %vm2120_vm4, %v2088_v41, 0.0  ;;  %v2150_v31 = vmul.f32 %v2088_v41, %v2088_v41  ;;  %v2181_v3 = vpack.c.bf16 %v2088_v41, %v2088_v41  ;;  %v2157_v44 = vsel %vm2120_vm4, %v2149_v38, 0.0 }
 0x1e2   : > { %2192 = vst.msk [vmem:[%s3290_s27 + $0xc] sm:$0xf] %vm2188_vm5, %v2183_v40  ;;  %v2126_v24 = vadd.f32 %v2125_v60, %v2124_v42  ;;  %v2162_v51 = vsel %vm2120_vm4, %v2152_v32, 0.0 }
 0x1e3   : > { %v2158_v45 = vsel %vm2120_vm4, %v2150_v31, 0.0  ;;  %2190 = vst.msk [vmem:[%s3290_s27 + $0x4] sm:$0xf] %vm2188_vm5, %v2181_v3 }
 0x1e4   : > { %v2128_v29 = vadd.f32 %v2127_v43, %v2126_v24  ;;  %v2159_v46 = vadd.f32 %v2158_v45, %v2157_v44 }
 0x1e6   : > { %v2161_v49 = vadd.f32 %v2160_v47, %v2159_v46  ;;  %v2130_v50 = vadd.f32 %v2129_v48, %v2128_v29 }
 0x1e8   : > { %v2163_v52 = vadd.f32 %v2162_v51, %v2161_v49 }
 0x203   : > { %v2586_v53 = vpop.f32.mrb[0].mxu1 }
 0x204   : > { %v2186_v54 = vpack.c.bf16 %v2586_v53, %v2586_v53  ;;  %v2101_v55 = vpop.f32.mrb[1].mxu1  ;;  %v2155_v62 = vmul.f32 %v2586_v53, %v2586_v53  ;;  %v2135_v10 = vsel %vm2120_vm4, %v2586_v53, 0.0 }
 0x205   : > { %v2131_v56 = vsel %vm2120_vm4, %v2101_v55, 0.0  ;;  %v2153_v57 = vmul.f32 %v2101_v55, %v2101_v55  ;;  %v2184_v59 = vpack.c.bf16 %v2101_v55, %v2101_v55  ;;  %v2587_v61 = vpop.f32.mrb[2].mxu1 }
 0x206   : > { %2195 = vst.msk [vmem:[%s3290_s27 + $0x18] sm:$0xf] %vm2188_vm5, %v2186_v54  ;;  %v2132_v63 = vadd.f32 %v2131_v56, %v2130_v50  ;;  %v2104_v0 = vpop.f32.mrb[3].mxu1  ;;  %v2187_v4 = vpack.c.bf16 %v2587_v61, %v2587_v61  ;;  %v2156_v11 = vmul.f32 %v2587_v61, %v2587_v61  ;;  %v2168_v15 = vsel %vm2120_vm4, %v2155_v62, 0.0 }
 0x207   : > { %v2164_v1 = vsel %vm2120_vm4, %v2153_v57, 0.0  ;;  %2193 = vst.msk [vmem:[%s3290_s27 + $0x10] sm:$0xf] %vm2188_vm5, %v2184_v59  ;;  %v2133_v5 = vsel %vm2120_vm4, %v2104_v0, 0.0  ;;  %v2154_v6 = vmul.f32 %v2104_v0, %v2104_v0  ;;  %v2185_v9 = vpack.c.bf16 %v2104_v0, %v2104_v0 }
 0x208   : > { %v2165_v7 = vadd.f32 %v2164_v1, %v2163_v52  ;;  %v2134_v8 = vadd.f32 %v2133_v5, %v2132_v63  ;;  %2196 = vst.msk [vmem:[%s3290_s27 + $0x1c] sm:$0xf] %vm2188_vm5, %v2187_v4  ;;  %v2137_v16 = vsel %vm2120_vm4, %v2587_v61, 0.0  ;;  %v2170_v19 = vsel %vm2120_vm4, %v2156_v11, 0.0 }
 0x209   : > { %v2166_v12 = vsel %vm2120_vm4, %v2154_v6, 0.0  ;;  %2194 = vst.msk [vmem:[%s3290_s27 + $0x14] sm:$0xf] %vm2188_vm5, %v2185_v9 }
 0x20a   : > { %v2136_v13 = vadd.f32 %v2135_v10, %v2134_v8  ;;  %v2167_v14 = vadd.f32 %v2166_v12, %v2165_v7 }
 0x20c   : > { %v2138_v17 = vadd.f32 %v2137_v16, %v2136_v13  ;;  %v2169_v18 = vadd.f32 %v2168_v15, %v2167_v14 }
 0x20e   : > { %v2139_v20 = vrot.slane %v2138_v17, 4  ;;  %v2171_v21 = vadd.f32 %v2170_v19, %v2169_v18 }
 0x210   : > { %v2140_v22 = vadd.f32 %v2139_v20, %v2138_v17  ;;  %v2172_v23 = vrot.slane %v2171_v21, 4 }
 0x212   : > { %v2141_v25 = vrot.slane %v2140_v22, 2  ;;  %v2173_v26 = vadd.f32 %v2172_v23, %v2171_v21 }
 0x214   : > { %v2142_v27 = vadd.f32 %v2141_v25, %v2140_v22  ;;  %v2174_v28 = vrot.slane %v2173_v26, 2 }
 0x216   : > { %v2143_v30 = vrot.slane %v2142_v27, 1  ;;  %v2175_v33 = vadd.f32 %v2174_v28, %v2173_v26 }
 0x218   : > { %v2144_v34 = vadd.f32 %v2143_v30, %v2142_v27  ;;  %v2176_v35 = vrot.slane %v2175_v33, 1 }
 0x21a   : > { %v2145_v38 = vadd.f32 %v2144_v34, %v2122_v2  ;;  %v2177_v58 = vadd.f32 %v2176_v35, %v2175_v33 }
 0x21c   : > { %2147 = vst.msk [vmem:[%s3282_s14] sm:$0x1] %vm2146_vm6, %v2145_v38  ;;  %v2178_v39 = vadd.f32 %v2177_v58, %v2148_v37 }
 0x21e   : > { %2179 = vst.msk [vmem:[%s3282_s14 + $0x1] sm:$0x1] %vm2146_vm6, %v2178_v39 }
 0x21f PF: > { %s17_s23 = sadd.s32 1, %s2708_s23   ;;  %s3346_s21 = smov %s2704_s22 }
 0x220   : > { %p14_p5 = scmp.ge.s32.totalorder %s17_s23, 4   ;;  %s3347_s22 = smov %s3349_s24 }
 0x222   :  { %16 = sbr.rel (!%p14_p5) target bundleno = 2 (0x2), region = 103 }

</bundles_post_ra>
